<compile_context>
chip_gen: v5e
topology: v5e:2x2
jax: 0.10.0
libtpu: 0.0.40
codegen_flags: <defaults>
</compile_context>

<pallas_src>
import functools

import jax
import jax.numpy as jnp
from jax.experimental import pallas as pl
from jax.experimental.pallas import tpu as pltpu

_HIGHEST = jax.lax.Precision.HIGHEST


def _fold_conv_bn(w, b, gamma, beta, mean, var, eps=1e-5):
    """Fold an inference-mode BatchNorm2d into the preceding 1x1 conv (w:[out,in], b:[out])."""
    s = gamma / jnp.sqrt(var + eps)
    return w * s[:, None], (b - mean) * s + beta


def _ocr_kernel(x_ref, kt_ref, val_ref,
                wp1_ref, bp1_ref, wp2_ref, bp2_ref,
                wu_ref, bu_ref, wo_ref, bo_ref,
                o_ref, *, approx_recip):
    # x_ref  : (1, C, T)     feats tile, channel-major (native NCHW), compute dtype
    # kt_ref : (1, K, Kc)    f_object(proxy)^T * key_channels**-0.5, per batch element
    # val_ref: (1, Kc, K)    f_down(proxy), per batch element
    # w*_ref : BN-folded 1x1 conv weights (compute dtype); b*_ref: f32 biases (chan, 1)
    # o_ref  : (1, outC, T)  output tile, channel-major, out dtype (bf16 by default)
    cdt = x_ref.dtype
    x = x_ref[0]                                                      # [C, T]

    # f_pixel: (1x1 conv + BN + ReLU) x 2  ->  query, channel-major  [Kc, T]
    q = jnp.dot(wp1_ref[...], x, preferred_element_type=jnp.float32)
    q = jnp.maximum(q + bp1_ref[...], 0.0).astype(cdt)
    q = jnp.dot(wp2_ref[...], q, preferred_element_type=jnp.float32)
    q = jnp.maximum(q + bp2_ref[...], 0.0).astype(cdt)                # [Kc, T]

    # sim^T[K, T] = (scale * key)^T @ query ; softmax over the K regions (axis 0), f32
    sim = jnp.dot(kt_ref[0], q, preferred_element_type=jnp.float32)
    sim = sim - jnp.max(sim, axis=0, keepdims=True)
    e = jnp.exp(sim)
    denom = jnp.sum(e, axis=0, keepdims=True)
    if approx_recip:
        sm = e * pl.reciprocal(denom, approx=True)     # EUP slot, bf16 path only
    else:
        sm = e / denom                                 # exact on the f32 path

    # context[Kc, T] = value @ sim^T
    ctx = jnp.dot(val_ref[0], sm.astype(cdt),
                  preferred_element_type=jnp.float32).astype(cdt)

    # f_up: 1x1 conv + BN + ReLU, Kc -> C
    up = jnp.dot(wu_ref[...], ctx, preferred_element_type=jnp.float32)
    up = jnp.maximum(up + bu_ref[...], 0.0).astype(cdt)               # [C, T]

    # conv_bn_dropout on cat([context, feats], dim=1): single 2C-deep contraction
    cat = jnp.concatenate([up, x], axis=0)                            # [2C, T], cdt
    out = jnp.dot(wo_ref[...], cat, preferred_element_type=jnp.float32)
    out = jnp.maximum(out + bo_ref[...], 0.0)                         # [outC, T]
    # TODO(synk): Dropout2d is identity in eval mode; training-mode channel dropout and
    # live BatchNorm statistics are not implemented.
    o_ref[0] = out.astype(o_ref.dtype)


def _vmem_capacity_bytes():
    try:
        return int(pltpu.get_tpu_info().vmem_capacity_bytes)
    except Exception:
        return 64 * 1024 * 1024        # conservative: v7x per-TC VMEM


def _pick_hw_tile(hw, cap):
    if hw <= cap:
        return hw                      # single full-extent tile (always a legal block)
    for cand in (4096, 2048, 1024, 512):
        if cand <= cap and hw % cand == 0:
            return cand                # exact divisor: every store lane-dense, unmasked
    return cap                         # ragged last tile only (columns are independent)


def _single_buffer_mode():
    try:
        return pl.Buffered(1)
    except Exception:
        try:
            return pl.Buffered(buffer_count=1)
        except Exception:
            return None


def spatial_ocr_forward(feats, proxy_feats, params, *,
                        compute_dtype=jnp.bfloat16, out_dtype=None):
    """JAX/Pallas forward of SpatialOCR_Module (scale=1, inference-mode BN / Dropout).

    feats:       [N, C, H, W]
    proxy_feats: [N, C, K, 1]   object-region features (e.g. from SpatialGather)
    returns:     [N, out_channels, H, W] in `out_dtype` (defaults to compute_dtype)
    """
    N, C, H, W = feats.shape
    Np, Cp, K, one = proxy_feats.shape
    assert Np == N and Cp == C and one == 1
    HW = H * W
    Kc = params["wp1"].shape[0]
    outC = params["wout"].shape[0]
    assert params["wout"].shape[1] == 2 * C

    cdt = compute_dtype
    odt = cdt if out_dtype is None else out_dtype
    approx_recip = jnp.dtype(cdt) != jnp.dtype(jnp.float32)
    scale = float(Kc) ** -0.5          # baked compile-time constant, folded into key

    # ---- tiny proxy branch (f_object / f_down): O(N*Kc*K) elems, plain-JAX glue ----
    pr = proxy_feats.reshape(N, C, K).astype(jnp.float32)

    def _cbr(w, b, t):  # folded 1x1 conv + BN + ReLU over the channel axis
        return jnp.maximum(
            jnp.einsum("oc,nck->nok", w, t, precision=_HIGHEST) + b[None, :, None], 0.0)

    key = _cbr(params["wo2"], params["bo2"], _cbr(params["wo1"], params["bo1"], pr))
    value = _cbr(params["wd"], params["bd"], pr)                      # [N, Kc, K]
    key_t = jnp.transpose(key, (0, 2, 1)) * scale                     # [N, K, Kc] (tiny)

    # ---- per-generation HW tile + VMEM budget ----
    vmem_cap = _vmem_capacity_bytes()
    out_bytes = jnp.dtype(odt).itemsize
    if vmem_cap >= 96 * 1024 * 1024:          # v5e / v6e: 128 MiB VMEM
        hw_cap = 4096
        vmem_limit = 96 * 1024 * 1024
    else:                                     # v7x (64 MiB per TC) or unknown
        hw_cap = 2048 if out_bytes <= 2 else 1024
        vmem_limit = 40 * 1024 * 1024
    vmem_limit = min(vmem_limit, (vmem_cap * 3) // 4)

    t_hw = _pick_hw_tile(HW, hw_cap)
    grid = (N, pl.cdiv(HW, t_hw))
    # TODO(synk): on v7x (2 TensorCores) an odd total tile count leaves one core idle
    # on the last step; tile-count parity is not rebalanced here.

    feats_r = feats.reshape(N, C, HW).astype(cdt)   # free reshape, NO HBM transpose
    key_t = key_t.astype(cdt)
    value = value.astype(cdt)

    def w2(name):
        return params[name].astype(cdt)

    def b2(name):                                   # bias as (chan, 1), kept f32
        return params[name].reshape(-1, 1).astype(jnp.float32)

    args = (feats_r, key_t, value,
            w2("wp1"), b2("bp1"), w2("wp2"), b2("bp2"),
            w2("wu"), b2("bu"), w2("wout"), b2("bout"))

    def make_call(single_buffer_weights):
        pm = _single_buffer_mode() if single_buffer_weights else None

        def full(shape):                            # grid-invariant weight/bias block
            if pm is not None:
                try:
                    return pl.BlockSpec(shape, lambda b, t: (0, 0), pipeline_mode=pm)
                except Exception:
                    pass
            return pl.BlockSpec(shape, lambda b, t: (0, 0))

        return pl.pallas_call(
            functools.partial(_ocr_kernel, approx_recip=approx_recip),
            out_shape=jax.ShapeDtypeStruct((N, outC, HW), odt),
            grid_spec=pltpu.PrefetchScalarGridSpec(
                num_scalar_prefetch=0,
                grid=grid,
                in_specs=[
                    pl.BlockSpec((1, C, t_hw), lambda b, t: (b, 0, t)),   # feats tile
                    pl.BlockSpec((1, K, Kc), lambda b, t: (b, 0, 0)),     # key^T * scale
                    pl.BlockSpec((1, Kc, K), lambda b, t: (b, 0, 0)),     # value
                    full((Kc, C)), full((Kc, 1)),                         # f_pixel conv1
                    full((Kc, Kc)), full((Kc, 1)),                        # f_pixel conv2
                    full((C, Kc)), full((C, 1)),                          # f_up
                    full((outC, 2 * C)), full((outC, 1)),                 # final conv
                ],
                out_specs=pl.BlockSpec((1, outC, t_hw), lambda b, t: (b, 0, t)),
            ),
            compiler_params=pltpu.CompilerParams(
                dimension_semantics=("parallel", "parallel"),
                vmem_limit_bytes=vmem_limit,
            ),
        )

    try:
        out = make_call(True)(*args)
    except Exception:
        # Fallback if single-buffered (Buffered(1)) operands are rejected by this JAX.
        out = make_call(False)(*args)

    return out.reshape(N, outC, H, W)
    # TODO(synk): scale>1 path (MaxPool2d + bilinear F.interpolate) and the
    # use_gt / use_bg / fetch_attention branches are not implemented (default flags only).


def _reference(feats, proxy_feats, params):
    """Pure-JAX f32 reference mirroring SpatialOCR_Module.forward (default flags)."""
    N, C, H, W = feats.shape
    K = proxy_feats.shape[2]
    HW = H * W
    Kc = params["wp1"].shape[0]

    def cbr(w, b, t):
        return jnp.maximum(
            jnp.einsum("oc,nci->noi", w, t, precision=_HIGHEST) + b[None, :, None], 0.0)

    x = feats.reshape(N, C, HW).astype(jnp.float32)
    pr = proxy_feats.reshape(N, C, K).astype(jnp.float32)

    query = cbr(params["wp2"], params["bp2"], cbr(params["wp1"], params["bp1"], x))  # [N,Kc,HW]
    key = cbr(params["wo2"], params["bo2"], cbr(params["wo1"], params["bo1"], pr))   # [N,Kc,K]
    value = cbr(params["wd"], params["bd"], pr)                                      # [N,Kc,K]

    sim = jnp.einsum("nkl,nkm->nlm", query, key, precision=_HIGHEST) * (Kc ** -0.5)  # [N,HW,K]
    sim = jax.nn.softmax(sim, axis=-1)
    ctx = jnp.einsum("nlm,ncm->ncl", sim, value, precision=_HIGHEST)                 # [N,Kc,HW]
    up = cbr(params["wu"], params["bu"], ctx)                                        # [N,C,HW]
    cat = jnp.concatenate([up, x], axis=1)                                           # [N,2C,HW]
    out = cbr(params["wout"], params["bout"], cat)                                   # [N,outC,HW]
    return out.reshape(N, -1, H, W)


if __name__ == "__main__":
    keys = jax.random.split(jax.random.PRNGKey(0), 16)

    N, C, Kc, outC = 2, 32, 16, 32    # batch, in_channels, key_channels, out_channels
    K = 8                             # number of object regions (proxy "spatial" size)
    H = W = 16

    def conv_init(k, o, i):
        kw, kb = jax.random.split(k)
        w = jax.random.normal(kw, (o, i), jnp.float32) / jnp.sqrt(i)
        b = 0.1 * jax.random.normal(kb, (o,), jnp.float32)
        return w, b

    def bn_init(k, c):
        k1, k2, k3, k4 = jax.random.split(k, 4)
        gamma = 1.0 + 0.1 * jax.random.normal(k1, (c,), jnp.float32)
        beta = 0.1 * jax.random.normal(k2, (c,), jnp.float32)
        mean = 0.1 * jax.random.normal(k3, (c,), jnp.float32)
        var = 1.0 + 0.1 * jax.random.uniform(k4, (c,), jnp.float32)
        return gamma, beta, mean, var

    def conv_bn(kc, kb, o, i):
        return _fold_conv_bn(*conv_init(kc, o, i), *bn_init(kb, o))

    params = {}
    params["wp1"], params["bp1"] = conv_bn(keys[0], keys[1], Kc, C)            # f_pixel[0]
    params["wp2"], params["bp2"] = conv_bn(keys[2], keys[3], Kc, Kc)           # f_pixel[1]
    params["wo1"], params["bo1"] = conv_bn(keys[4], keys[5], Kc, C)            # f_object[0]
    params["wo2"], params["bo2"] = conv_bn(keys[6], keys[7], Kc, Kc)           # f_object[1]
    params["wd"], params["bd"] = conv_bn(keys[8], keys[9], Kc, C)              # f_down
    params["wu"], params["bu"] = conv_bn(keys[10], keys[11], C, Kc)            # f_up
    params["wout"], params["bout"] = conv_bn(keys[12], keys[13], outC, 2 * C)  # conv_bn_dropout

    feats = jax.random.normal(keys[14], (N, C, H, W), jnp.float32)
    proxy = jax.random.normal(keys[15], (N, C, K, 1), jnp.float32)

    ref = _reference(feats, proxy, params)

    # f32 streams + f32 output + exact softmax division: tight check vs. reference.
    out_f32 = jax.block_until_ready(
        spatial_ocr_forward(feats, proxy, params, compute_dtype=jnp.float32))
    assert out_f32.shape == (N, outC, H, W), out_f32.shape
    assert out_f32.dtype == jnp.float32, out_f32.dtype
    assert jnp.allclose(out_f32, ref, atol=1e-2, rtol=1e-2), \
        float(jnp.max(jnp.abs(out_f32 - ref)))

    # bf16 streams + bf16 output (the bandwidth-optimized default path): looser check.
    out_bf16 = jax.block_until_ready(
        spatial_ocr_forward(feats, proxy, params, compute_dtype=jnp.bfloat16))
    assert out_bf16.shape == (N, outC, H, W), out_bf16.shape
    assert out_bf16.dtype == jnp.bfloat16, out_bf16.dtype
    assert jnp.allclose(out_bf16.astype(jnp.float32), ref, atol=1e-1, rtol=1e-1), \
        float(jnp.max(jnp.abs(out_bf16.astype(jnp.float32) - ref)))

    print("KERNEL_OK")
</pallas_src>

<mosaic_0001>
module attributes {stable_mosaic.version = 11 : i64} {
  func.func @_ocr_kernel(%arg0: i32, %arg1: i32, %arg2: memref<1x32x256xf32, #tpu.memory_space<vmem>>, %arg3: memref<1x8x16xf32, #tpu.memory_space<vmem>>, %arg4: memref<1x16x8xf32, #tpu.memory_space<vmem>>, %arg5: memref<16x32xf32, #tpu.memory_space<vmem>>, %arg6: memref<16x1xf32, #tpu.memory_space<vmem>>, %arg7: memref<16x16xf32, #tpu.memory_space<vmem>>, %arg8: memref<16x1xf32, #tpu.memory_space<vmem>>, %arg9: memref<32x16xf32, #tpu.memory_space<vmem>>, %arg10: memref<32x1xf32, #tpu.memory_space<vmem>>, %arg11: memref<32x64xf32, #tpu.memory_space<vmem>>, %arg12: memref<32x1xf32, #tpu.memory_space<vmem>>, %arg13: memref<1x32x256xf32, #tpu.memory_space<vmem>>) attributes {dimension_semantics = [#tpu.dimension_semantics<parallel>, #tpu.dimension_semantics<parallel>], iteration_bounds = array<i64: 2, 1>, scalar_prefetch = 0 : i64, scratch_operands = 0 : i64, tpu.core_type = #tpu.core_type<tc>, window_params = [{transform_indices = @transform_0, window_bounds = array<i64: 1, 32, 256>}, {transform_indices = @transform_1, window_bounds = array<i64: 1, 8, 16>}, {transform_indices = @transform_2, window_bounds = array<i64: 1, 16, 8>}, {pipeline_mode = #tpu.pipeline_mode<synchronous>, transform_indices = @transform_3, window_bounds = array<i64: 16, 32>}, {pipeline_mode = #tpu.pipeline_mode<synchronous>, transform_indices = @transform_4, window_bounds = array<i64: 16, 1>}, {pipeline_mode = #tpu.pipeline_mode<synchronous>, transform_indices = @transform_5, window_bounds = array<i64: 16, 16>}, {pipeline_mode = #tpu.pipeline_mode<synchronous>, transform_indices = @transform_6, window_bounds = array<i64: 16, 1>}, {pipeline_mode = #tpu.pipeline_mode<synchronous>, transform_indices = @transform_7, window_bounds = array<i64: 32, 16>}, {pipeline_mode = #tpu.pipeline_mode<synchronous>, transform_indices = @transform_8, window_bounds = array<i64: 32, 1>}, {pipeline_mode = #tpu.pipeline_mode<synchronous>, transform_indices = @transform_9, window_bounds = array<i64: 32, 64>}, {pipeline_mode = #tpu.pipeline_mode<synchronous>, transform_indices = @transform_10, window_bounds = array<i64: 32, 1>}, {transform_indices = @transform_11, window_bounds = array<i64: 1, 32, 256>}]} {
    %c0 = arith.constant 0 : index
    %c0_0 = arith.constant 0 : index
    %c0_1 = arith.constant 0 : index
    %0 = vector.load %arg2[%c0, %c0_0, %c0_1] : memref<1x32x256xf32, #tpu.memory_space<vmem>>, vector<1x32x256xf32>
    %1 = vector.shape_cast %0 : vector<1x32x256xf32> to vector<32x256xf32>
    %c0_2 = arith.constant 0 : index
    %c0_3 = arith.constant 0 : index
    %2 = vector.load %arg5[%c0_2, %c0_3] : memref<16x32xf32, #tpu.memory_space<vmem>>, vector<16x32xf32>
    %cst = arith.constant dense<0.000000e+00> : vector<16x256xf32>
    %3 = tpu.matmul %2, %1, %cst {dimension_numbers = #tpu.dot_dimension_numbers<[1], [0], [0], [1], [0, 0, 1, 1], [], []>} : vector<16x32xf32>, vector<32x256xf32>, vector<16x256xf32> -> vector<16x256xf32>
    %c0_4 = arith.constant 0 : index
    %c0_5 = arith.constant 0 : index
    %4 = vector.load %arg6[%c0_4, %c0_5] : memref<16x1xf32, #tpu.memory_space<vmem>>, vector<16x1xf32>
    %5 = vector.broadcast %4 : vector<16x1xf32> to vector<16x256xf32>
    %6 = arith.addf %3, %5 : vector<16x256xf32>
    %cst_6 = arith.constant 0.000000e+00 : f32
    %7 = vector.broadcast %cst_6 : f32 to vector<16x256xf32>
    %8 = arith.maximumf %6, %7 : vector<16x256xf32>
    %c0_7 = arith.constant 0 : index
    %c0_8 = arith.constant 0 : index
    %9 = vector.load %arg7[%c0_7, %c0_8] : memref<16x16xf32, #tpu.memory_space<vmem>>, vector<16x16xf32>
    %cst_9 = arith.constant dense<0.000000e+00> : vector<16x256xf32>
    %10 = tpu.matmul %9, %8, %cst_9 {dimension_numbers = #tpu.dot_dimension_numbers<[1], [0], [0], [1], [0, 0, 1, 1], [], []>} : vector<16x16xf32>, vector<16x256xf32>, vector<16x256xf32> -> vector<16x256xf32>
    %c0_10 = arith.constant 0 : index
    %c0_11 = arith.constant 0 : index
    %11 = vector.load %arg8[%c0_10, %c0_11] : memref<16x1xf32, #tpu.memory_space<vmem>>, vector<16x1xf32>
    %12 = vector.broadcast %11 : vector<16x1xf32> to vector<16x256xf32>
    %13 = arith.addf %10, %12 : vector<16x256xf32>
    %cst_12 = arith.constant 0.000000e+00 : f32
    %14 = vector.broadcast %cst_12 : f32 to vector<16x256xf32>
    %15 = arith.maximumf %13, %14 : vector<16x256xf32>
    %c0_13 = arith.constant 0 : index
    %c0_14 = arith.constant 0 : index
    %c0_15 = arith.constant 0 : index
    %16 = vector.load %arg3[%c0_13, %c0_14, %c0_15] : memref<1x8x16xf32, #tpu.memory_space<vmem>>, vector<1x8x16xf32>
    %17 = vector.shape_cast %16 : vector<1x8x16xf32> to vector<8x16xf32>
    %cst_16 = arith.constant dense<0.000000e+00> : vector<8x256xf32>
    %18 = tpu.matmul %17, %15, %cst_16 {dimension_numbers = #tpu.dot_dimension_numbers<[1], [0], [0], [1], [0, 0, 1, 1], [], []>} : vector<8x16xf32>, vector<16x256xf32>, vector<8x256xf32> -> vector<8x256xf32>
    %cst_17 = arith.constant dense<0xFF800000> : vector<256xf32>
    %19 = vector.multi_reduction <maximumf>, %18, %cst_17 [0] : vector<8x256xf32> to vector<256xf32>
    %20 = vector.shape_cast %19 : vector<256xf32> to vector<1x256xf32>
    %21 = vector.broadcast %20 : vector<1x256xf32> to vector<8x256xf32>
    %22 = arith.subf %18, %21 : vector<8x256xf32>
    %23 = math.exp %22 : vector<8x256xf32>
    %cst_18 = arith.constant dense<0.000000e+00> : vector<256xf32>
    %24 = vector.multi_reduction <add>, %23, %cst_18 [0] : vector<8x256xf32> to vector<256xf32>
    %25 = vector.shape_cast %24 : vector<256xf32> to vector<1x256xf32>
    %26 = vector.broadcast %25 : vector<1x256xf32> to vector<8x256xf32>
    %27 = arith.divf %23, %26 : vector<8x256xf32>
    %c0_19 = arith.constant 0 : index
    %c0_20 = arith.constant 0 : index
    %c0_21 = arith.constant 0 : index
    %28 = vector.load %arg4[%c0_19, %c0_20, %c0_21] : memref<1x16x8xf32, #tpu.memory_space<vmem>>, vector<1x16x8xf32>
    %29 = vector.shape_cast %28 : vector<1x16x8xf32> to vector<16x8xf32>
    %cst_22 = arith.constant dense<0.000000e+00> : vector<16x256xf32>
    %30 = tpu.matmul %29, %27, %cst_22 {dimension_numbers = #tpu.dot_dimension_numbers<[1], [0], [0], [1], [0, 0, 1, 1], [], []>} : vector<16x8xf32>, vector<8x256xf32>, vector<16x256xf32> -> vector<16x256xf32>
    %c0_23 = arith.constant 0 : index
    %c0_24 = arith.constant 0 : index
    %31 = vector.load %arg9[%c0_23, %c0_24] : memref<32x16xf32, #tpu.memory_space<vmem>>, vector<32x16xf32>
    %cst_25 = arith.constant dense<0.000000e+00> : vector<32x256xf32>
    %32 = tpu.matmul %31, %30, %cst_25 {dimension_numbers = #tpu.dot_dimension_numbers<[1], [0], [0], [1], [0, 0, 1, 1], [], []>} : vector<32x16xf32>, vector<16x256xf32>, vector<32x256xf32> -> vector<32x256xf32>
    %c0_26 = arith.constant 0 : index
    %c0_27 = arith.constant 0 : index
    %33 = vector.load %arg10[%c0_26, %c0_27] : memref<32x1xf32, #tpu.memory_space<vmem>>, vector<32x1xf32>
    %34 = vector.broadcast %33 : vector<32x1xf32> to vector<32x256xf32>
    %35 = arith.addf %32, %34 : vector<32x256xf32>
    %cst_28 = arith.constant 0.000000e+00 : f32
    %36 = vector.broadcast %cst_28 : f32 to vector<32x256xf32>
    %37 = arith.maximumf %35, %36 : vector<32x256xf32>
    %38 = tpu.concatenate %37, %1 in 0 : vector<32x256xf32>, vector<32x256xf32> -> vector<64x256xf32>
    %c0_29 = arith.constant 0 : index
    %c0_30 = arith.constant 0 : index
    %39 = vector.load %arg11[%c0_29, %c0_30] : memref<32x64xf32, #tpu.memory_space<vmem>>, vector<32x64xf32>
    %cst_31 = arith.constant dense<0.000000e+00> : vector<32x256xf32>
    %40 = tpu.matmul %39, %38, %cst_31 {dimension_numbers = #tpu.dot_dimension_numbers<[1], [0], [0], [1], [0, 0, 1, 1], [], []>} : vector<32x64xf32>, vector<64x256xf32>, vector<32x256xf32> -> vector<32x256xf32>
    %c0_32 = arith.constant 0 : index
    %c0_33 = arith.constant 0 : index
    %41 = vector.load %arg12[%c0_32, %c0_33] : memref<32x1xf32, #tpu.memory_space<vmem>>, vector<32x1xf32>
    %42 = vector.broadcast %41 : vector<32x1xf32> to vector<32x256xf32>
    %43 = arith.addf %40, %42 : vector<32x256xf32>
    %cst_34 = arith.constant 0.000000e+00 : f32
    %44 = vector.broadcast %cst_34 : f32 to vector<32x256xf32>
    %45 = arith.maximumf %43, %44 : vector<32x256xf32>
    %c0_35 = arith.constant 0 : index
    %c0_36 = arith.constant 0 : index
    %c0_37 = arith.constant 0 : index
    %46 = vector.load %arg13[%c0_35, %c0_36, %c0_37] : memref<1x32x256xf32, #tpu.memory_space<vmem>>, vector<1x32x256xf32>
    %47 = vector.shape_cast %46 : vector<1x32x256xf32> to vector<32x256xf32>
    %48 = vector.shape_cast %45 : vector<32x256xf32> to vector<1x32x256xf32>
    tpu.vector_store %arg13[%c0_35, %c0_36, %c0_37], %48 {strides = array<i32>} : memref<1x32x256xf32, #tpu.memory_space<vmem>>, vector<1x32x256xf32>,
    return
  }
  func.func @transform_0(%arg0: i32, %arg1: i32) -> (i32, i32, i32) {
    %c0_i32 = arith.constant 0 : i32
    %c0_i32_0 = arith.constant 0 : i32
    return %arg0, %c0_i32, %arg1 : i32, i32, i32
  }
  func.func @transform_1(%arg0: i32, %arg1: i32) -> (i32, i32, i32) {
    %c0_i32 = arith.constant 0 : i32
    %c0_i32_0 = arith.constant 0 : i32
    %c0_i32_1 = arith.constant 0 : i32
    return %arg0, %c0_i32, %c0_i32_0 : i32, i32, i32
  }
  func.func @transform_2(%arg0: i32, %arg1: i32) -> (i32, i32, i32) {
    %c0_i32 = arith.constant 0 : i32
    %c0_i32_0 = arith.constant 0 : i32
    %c0_i32_1 = arith.constant 0 : i32
    return %arg0, %c0_i32, %c0_i32_0 : i32, i32, i32
  }
  func.func @transform_3(%arg0: i32, %arg1: i32) -> (i32, i32) {
    %c0_i32 = arith.constant 0 : i32
    %c0_i32_0 = arith.constant 0 : i32
    %c0_i32_1 = arith.constant 0 : i32
    return %c0_i32, %c0_i32_0 : i32, i32
  }
  func.func @transform_4(%arg0: i32, %arg1: i32) -> (i32, i32) {
    %c0_i32 = arith.constant 0 : i32
    %c0_i32_0 = arith.constant 0 : i32
    %c0_i32_1 = arith.constant 0 : i32
    return %c0_i32, %c0_i32_0 : i32, i32
  }
  func.func @transform_5(%arg0: i32, %arg1: i32) -> (i32, i32) {
    %c0_i32 = arith.constant 0 : i32
    %c0_i32_0 = arith.constant 0 : i32
    %c0_i32_1 = arith.constant 0 : i32
    return %c0_i32, %c0_i32_0 : i32, i32
  }
  func.func @transform_6(%arg0: i32, %arg1: i32) -> (i32, i32) {
    %c0_i32 = arith.constant 0 : i32
    %c0_i32_0 = arith.constant 0 : i32
    %c0_i32_1 = arith.constant 0 : i32
    return %c0_i32, %c0_i32_0 : i32, i32
  }
  func.func @transform_7(%arg0: i32, %arg1: i32) -> (i32, i32) {
    %c0_i32 = arith.constant 0 : i32
    %c0_i32_0 = arith.constant 0 : i32
    %c0_i32_1 = arith.constant 0 : i32
    return %c0_i32, %c0_i32_0 : i32, i32
  }
  func.func @transform_8(%arg0: i32, %arg1: i32) -> (i32, i32) {
    %c0_i32 = arith.constant 0 : i32
    %c0_i32_0 = arith.constant 0 : i32
    %c0_i32_1 = arith.constant 0 : i32
    return %c0_i32, %c0_i32_0 : i32, i32
  }
  func.func @transform_9(%arg0: i32, %arg1: i32) -> (i32, i32) {
    %c0_i32 = arith.constant 0 : i32
    %c0_i32_0 = arith.constant 0 : i32
    %c0_i32_1 = arith.constant 0 : i32
    return %c0_i32, %c0_i32_0 : i32, i32
  }
  func.func @transform_10(%arg0: i32, %arg1: i32) -> (i32, i32) {
    %c0_i32 = arith.constant 0 : i32
    %c0_i32_0 = arith.constant 0 : i32
    %c0_i32_1 = arith.constant 0 : i32
    return %c0_i32, %c0_i32_0 : i32, i32
  }
  func.func @transform_11(%arg0: i32, %arg1: i32) -> (i32, i32, i32) {
    %c0_i32 = arith.constant 0 : i32
    %c0_i32_0 = arith.constant 0 : i32
    return %arg0, %c0_i32, %arg1 : i32, i32, i32
  }
}

module attributes {stable_mosaic.version = 11 : i64} {
  func.func @_ocr_kernel(%arg0: i32, %arg1: i32, %arg2: memref<1x32x256xf32, #tpu.memory_space<vmem>>, %arg3: memref<1x8x16xf32, #tpu.memory_space<vmem>>, %arg4: memref<1x16x8xf32, #tpu.memory_space<vmem>>, %arg5: memref<16x32xf32, #tpu.memory_space<vmem>>, %arg6: memref<16x1xf32, #tpu.memory_space<vmem>>, %arg7: memref<16x16xf32, #tpu.memory_space<vmem>>, %arg8: memref<16x1xf32, #tpu.memory_space<vmem>>, %arg9: memref<32x16xf32, #tpu.memory_space<vmem>>, %arg10: memref<32x1xf32, #tpu.memory_space<vmem>>, %arg11: memref<32x64xf32, #tpu.memory_space<vmem>>, %arg12: memref<32x1xf32, #tpu.memory_space<vmem>>, %arg13: memref<1x32x256xf32, #tpu.memory_space<vmem>>) attributes {dimension_semantics = [#tpu.dimension_semantics<parallel>, #tpu.dimension_semantics<parallel>], iteration_bounds = array<i64: 2, 1>, scalar_prefetch = 0 : i64, scratch_operands = 0 : i64, tpu.core_type = #tpu.core_type<tc>, window_params = [{transform_indices = @transform_0, window_bounds = array<i64: 1, 32, 256>}, {transform_indices = @transform_1, window_bounds = array<i64: 1, 8, 16>}, {transform_indices = @transform_2, window_bounds = array<i64: 1, 16, 8>}, {pipeline_mode = #tpu.pipeline_mode<synchronous>, transform_indices = @transform_3, window_bounds = array<i64: 16, 32>}, {pipeline_mode = #tpu.pipeline_mode<synchronous>, transform_indices = @transform_4, window_bounds = array<i64: 16, 1>}, {pipeline_mode = #tpu.pipeline_mode<synchronous>, transform_indices = @transform_5, window_bounds = array<i64: 16, 16>}, {pipeline_mode = #tpu.pipeline_mode<synchronous>, transform_indices = @transform_6, window_bounds = array<i64: 16, 1>}, {pipeline_mode = #tpu.pipeline_mode<synchronous>, transform_indices = @transform_7, window_bounds = array<i64: 32, 16>}, {pipeline_mode = #tpu.pipeline_mode<synchronous>, transform_indices = @transform_8, window_bounds = array<i64: 32, 1>}, {pipeline_mode = #tpu.pipeline_mode<synchronous>, transform_indices = @transform_9, window_bounds = array<i64: 32, 64>}, {pipeline_mode = #tpu.pipeline_mode<synchronous>, transform_indices = @transform_10, window_bounds = array<i64: 32, 1>}, {transform_indices = @transform_11, window_bounds = array<i64: 1, 32, 256>}]} {
    %c0 = arith.constant 0 : index
    %c0_0 = arith.constant 0 : index
    %c0_1 = arith.constant 0 : index
    %0 = vector.load %arg2[%c0, %c0_0, %c0_1] : memref<1x32x256xf32, #tpu.memory_space<vmem>>, vector<1x32x256xf32>
    %1 = vector.shape_cast %0 : vector<1x32x256xf32> to vector<32x256xf32>
    %c0_2 = arith.constant 0 : index
    %c0_3 = arith.constant 0 : index
    %2 = vector.load %arg5[%c0_2, %c0_3] : memref<16x32xf32, #tpu.memory_space<vmem>>, vector<16x32xf32>
    %cst = arith.constant dense<0.000000e+00> : vector<16x256xf32>
    %3 = tpu.matmul %2, %1, %cst {dimension_numbers = #tpu.dot_dimension_numbers<[1], [0], [0], [1], [0, 0, 1, 1], [], []>} : vector<16x32xf32>, vector<32x256xf32>, vector<16x256xf32> -> vector<16x256xf32>
    %c0_4 = arith.constant 0 : index
    %c0_5 = arith.constant 0 : index
    %4 = vector.load %arg6[%c0_4, %c0_5] : memref<16x1xf32, #tpu.memory_space<vmem>>, vector<16x1xf32>
    %5 = vector.broadcast %4 : vector<16x1xf32> to vector<16x256xf32>
    %6 = arith.addf %3, %5 : vector<16x256xf32>
    %cst_6 = arith.constant 0.000000e+00 : f32
    %7 = vector.broadcast %cst_6 : f32 to vector<16x256xf32>
    %8 = arith.maximumf %6, %7 : vector<16x256xf32>
    %c0_7 = arith.constant 0 : index
    %c0_8 = arith.constant 0 : index
    %9 = vector.load %arg7[%c0_7, %c0_8] : memref<16x16xf32, #tpu.memory_space<vmem>>, vector<16x16xf32>
    %cst_9 = arith.constant dense<0.000000e+00> : vector<16x256xf32>
    %10 = tpu.matmul %9, %8, %cst_9 {dimension_numbers = #tpu.dot_dimension_numbers<[1], [0], [0], [1], [0, 0, 1, 1], [], []>} : vector<16x16xf32>, vector<16x256xf32>, vector<16x256xf32> -> vector<16x256xf32>
    %c0_10 = arith.constant 0 : index
    %c0_11 = arith.constant 0 : index
    %11 = vector.load %arg8[%c0_10, %c0_11] : memref<16x1xf32, #tpu.memory_space<vmem>>, vector<16x1xf32>
    %12 = vector.broadcast %11 : vector<16x1xf32> to vector<16x256xf32>
    %13 = arith.addf %10, %12 : vector<16x256xf32>
    %cst_12 = arith.constant 0.000000e+00 : f32
    %14 = vector.broadcast %cst_12 : f32 to vector<16x256xf32>
    %15 = arith.maximumf %13, %14 : vector<16x256xf32>
    %c0_13 = arith.constant 0 : index
    %c0_14 = arith.constant 0 : index
    %c0_15 = arith.constant 0 : index
    %16 = vector.load %arg3[%c0_13, %c0_14, %c0_15] : memref<1x8x16xf32, #tpu.memory_space<vmem>>, vector<1x8x16xf32>
    %17 = vector.shape_cast %16 : vector<1x8x16xf32> to vector<8x16xf32>
    %cst_16 = arith.constant dense<0.000000e+00> : vector<8x256xf32>
    %18 = tpu.matmul %17, %15, %cst_16 {dimension_numbers = #tpu.dot_dimension_numbers<[1], [0], [0], [1], [0, 0, 1, 1], [], []>} : vector<8x16xf32>, vector<16x256xf32>, vector<8x256xf32> -> vector<8x256xf32>
    %cst_17 = arith.constant dense<0xFF800000> : vector<256xf32>
    %19 = vector.multi_reduction <maximumf>, %18, %cst_17 [0] : vector<8x256xf32> to vector<256xf32>
    %20 = vector.shape_cast %19 : vector<256xf32> to vector<1x256xf32>
    %21 = vector.broadcast %20 : vector<1x256xf32> to vector<8x256xf32>
    %22 = arith.subf %18, %21 : vector<8x256xf32>
    %23 = math.exp %22 : vector<8x256xf32>
    %cst_18 = arith.constant dense<0.000000e+00> : vector<256xf32>
    %24 = vector.multi_reduction <add>, %23, %cst_18 [0] : vector<8x256xf32> to vector<256xf32>
    %25 = vector.shape_cast %24 : vector<256xf32> to vector<1x256xf32>
    %26 = vector.broadcast %25 : vector<1x256xf32> to vector<8x256xf32>
    %27 = arith.divf %23, %26 : vector<8x256xf32>
    %c0_19 = arith.constant 0 : index
    %c0_20 = arith.constant 0 : index
    %c0_21 = arith.constant 0 : index
    %28 = vector.load %arg4[%c0_19, %c0_20, %c0_21] : memref<1x16x8xf32, #tpu.memory_space<vmem>>, vector<1x16x8xf32>
    %29 = vector.shape_cast %28 : vector<1x16x8xf32> to vector<16x8xf32>
    %cst_22 = arith.constant dense<0.000000e+00> : vector<16x256xf32>
    %30 = tpu.matmul %29, %27, %cst_22 {dimension_numbers = #tpu.dot_dimension_numbers<[1], [0], [0], [1], [0, 0, 1, 1], [], []>} : vector<16x8xf32>, vector<8x256xf32>, vector<16x256xf32> -> vector<16x256xf32>
    %c0_23 = arith.constant 0 : index
    %c0_24 = arith.constant 0 : index
    %31 = vector.load %arg9[%c0_23, %c0_24] : memref<32x16xf32, #tpu.memory_space<vmem>>, vector<32x16xf32>
    %cst_25 = arith.constant dense<0.000000e+00> : vector<32x256xf32>
    %32 = tpu.matmul %31, %30, %cst_25 {dimension_numbers = #tpu.dot_dimension_numbers<[1], [0], [0], [1], [0, 0, 1, 1], [], []>} : vector<32x16xf32>, vector<16x256xf32>, vector<32x256xf32> -> vector<32x256xf32>
    %c0_26 = arith.constant 0 : index
    %c0_27 = arith.constant 0 : index
    %33 = vector.load %arg10[%c0_26, %c0_27] : memref<32x1xf32, #tpu.memory_space<vmem>>, vector<32x1xf32>
    %34 = vector.broadcast %33 : vector<32x1xf32> to vector<32x256xf32>
    %35 = arith.addf %32, %34 : vector<32x256xf32>
    %cst_28 = arith.constant 0.000000e+00 : f32
    %36 = vector.broadcast %cst_28 : f32 to vector<32x256xf32>
    %37 = arith.maximumf %35, %36 : vector<32x256xf32>
    %38 = tpu.concatenate %37, %1 in 0 : vector<32x256xf32>, vector<32x256xf32> -> vector<64x256xf32>
    %c0_29 = arith.constant 0 : index
    %c0_30 = arith.constant 0 : index
    %39 = vector.load %arg11[%c0_29, %c0_30] : memref<32x64xf32, #tpu.memory_space<vmem>>, vector<32x64xf32>
    %cst_31 = arith.constant dense<0.000000e+00> : vector<32x256xf32>
    %40 = tpu.matmul %39, %38, %cst_31 {dimension_numbers = #tpu.dot_dimension_numbers<[1], [0], [0], [1], [0, 0, 1, 1], [], []>} : vector<32x64xf32>, vector<64x256xf32>, vector<32x256xf32> -> vector<32x256xf32>
    %c0_32 = arith.constant 0 : index
    %c0_33 = arith.constant 0 : index
    %41 = vector.load %arg12[%c0_32, %c0_33] : memref<32x1xf32, #tpu.memory_space<vmem>>, vector<32x1xf32>
    %42 = vector.broadcast %41 : vector<32x1xf32> to vector<32x256xf32>
    %43 = arith.addf %40, %42 : vector<32x256xf32>
    %cst_34 = arith.constant 0.000000e+00 : f32
    %44 = vector.broadcast %cst_34 : f32 to vector<32x256xf32>
    %45 = arith.maximumf %43, %44 : vector<32x256xf32>
    %c0_35 = arith.constant 0 : index
    %c0_36 = arith.constant 0 : index
    %c0_37 = arith.constant 0 : index
    %46 = vector.load %arg13[%c0_35, %c0_36, %c0_37] : memref<1x32x256xf32, #tpu.memory_space<vmem>>, vector<1x32x256xf32>
    %47 = vector.shape_cast %46 : vector<1x32x256xf32> to vector<32x256xf32>
    %48 = vector.shape_cast %45 : vector<32x256xf32> to vector<1x32x256xf32>
    tpu.vector_store %arg13[%c0_35, %c0_36, %c0_37], %48 {strides = array<i32>} : memref<1x32x256xf32, #tpu.memory_space<vmem>>, vector<1x32x256xf32>,
    return
  }
  func.func @transform_0(%arg0: i32, %arg1: i32) -> (i32, i32, i32) {
    %c0_i32 = arith.constant 0 : i32
    %c0_i32_0 = arith.constant 0 : i32
    return %arg0, %c0_i32, %arg1 : i32, i32, i32
  }
  func.func @transform_1(%arg0: i32, %arg1: i32) -> (i32, i32, i32) {
    %c0_i32 = arith.constant 0 : i32
    %c0_i32_0 = arith.constant 0 : i32
    %c0_i32_1 = arith.constant 0 : i32
    return %arg0, %c0_i32, %c0_i32_0 : i32, i32, i32
  }
  func.func @transform_2(%arg0: i32, %arg1: i32) -> (i32, i32, i32) {
    %c0_i32 = arith.constant 0 : i32
    %c0_i32_0 = arith.constant 0 : i32
    %c0_i32_1 = arith.constant 0 : i32
    return %arg0, %c0_i32, %c0_i32_0 : i32, i32, i32
  }
  func.func @transform_3(%arg0: i32, %arg1: i32) -> (i32, i32) {
    %c0_i32 = arith.constant 0 : i32
    %c0_i32_0 = arith.constant 0 : i32
    %c0_i32_1 = arith.constant 0 : i32
    return %c0_i32, %c0_i32_0 : i32, i32
  }
  func.func @transform_4(%arg0: i32, %arg1: i32) -> (i32, i32) {
    %c0_i32 = arith.constant 0 : i32
    %c0_i32_0 = arith.constant 0 : i32
    %c0_i32_1 = arith.constant 0 : i32
    return %c0_i32, %c0_i32_0 : i32, i32
  }
  func.func @transform_5(%arg0: i32, %arg1: i32) -> (i32, i32) {
    %c0_i32 = arith.constant 0 : i32
    %c0_i32_0 = arith.constant 0 : i32
    %c0_i32_1 = arith.constant 0 : i32
    return %c0_i32, %c0_i32_0 : i32, i32
  }
  func.func @transform_6(%arg0: i32, %arg1: i32) -> (i32, i32) {
    %c0_i32 = arith.constant 0 : i32
    %c0_i32_0 = arith.constant 0 : i32
    %c0_i32_1 = arith.constant 0 : i32
    return %c0_i32, %c0_i32_0 : i32, i32
  }
  func.func @transform_7(%arg0: i32, %arg1: i32) -> (i32, i32) {
    %c0_i32 = arith.constant 0 : i32
    %c0_i32_0 = arith.constant 0 : i32
    %c0_i32_1 = arith.constant 0 : i32
    return %c0_i32, %c0_i32_0 : i32, i32
  }
  func.func @transform_8(%arg0: i32, %arg1: i32) -> (i32, i32) {
    %c0_i32 = arith.constant 0 : i32
    %c0_i32_0 = arith.constant 0 : i32
    %c0_i32_1 = arith.constant 0 : i32
    return %c0_i32, %c0_i32_0 : i32, i32
  }
  func.func @transform_9(%arg0: i32, %arg1: i32) -> (i32, i32) {
    %c0_i32 = arith.constant 0 : i32
    %c0_i32_0 = arith.constant 0 : i32
    %c0_i32_1 = arith.constant 0 : i32
    return %c0_i32, %c0_i32_0 : i32, i32
  }
  func.func @transform_10(%arg0: i32, %arg1: i32) -> (i32, i32) {
    %c0_i32 = arith.constant 0 : i32
    %c0_i32_0 = arith.constant 0 : i32
    %c0_i32_1 = arith.constant 0 : i32
    return %c0_i32, %c0_i32_0 : i32, i32
  }
  func.func @transform_11(%arg0: i32, %arg1: i32) -> (i32, i32, i32) {
    %c0_i32 = arith.constant 0 : i32
    %c0_i32_0 = arith.constant 0 : i32
    return %arg0, %c0_i32, %arg1 : i32, i32, i32
  }
}

</mosaic_0001>

<bundles_post_ra>
// kernel: tpu_custom_call.1
= control target key start
LH: loop header
LB: loop body
LE: loop exit
PB: predicated region body
PF: predicated region fallthrough
CT: control target
= control target key end

     0   :  { %s1700_s0 = inlined_call_operand.hbm [shape: f32[2,32,256], index: 0, kind: input, shape index: {}]   ;;  %s1701_s1 = inlined_call_operand.vmem [shape: f32[2,8,16], index: 1, kind: input, shape index: {}]   ;;  %s1702_s2 = inlined_call_operand.vmem [shape: f32[2,16,8], index: 2, kind: input, shape index: {}]   ;;  %s1703_s3 = inlined_call_operand.vmem [shape: f32[16,32], index: 3, kind: input, shape index: {}]   ;;  %s1704_s4 = inlined_call_operand.vmem [shape: f32[16,1], index: 4, kind: input, shape index: {}]   ;;  %s1705_s5 = inlined_call_operand.vmem [shape: f32[16,16], index: 5, kind: input, shape index: {}]   ;;  %s1706_s6 = inlined_call_operand.vmem [shape: f32[16,1], index: 6, kind: input, shape index: {}]   ;;  %s1707_s7 = inlined_call_operand.vmem [shape: f32[32,16], index: 7, kind: input, shape index: {}]   ;;  %s1708_s8 = inlined_call_operand.vmem [shape: f32[32,1], index: 8, kind: input, shape index: {}]   ;;  %s1709_s9 = inlined_call_operand.vmem [shape: f32[32,64], index: 9, kind: input, shape index: {}]   ;;  %s1710_s10 = inlined_call_operand.vmem [shape: f32[32,1], index: 10, kind: input, shape index: {}]   ;;  %s1711_s11 = inlined_call_operand.hbm [shape: f32[2,32,256], index: 11, kind: output, shape index: {}]  }
   0x1   :  { %1718 = sst [smem:[#allocation13_spill]] %s1711_s11 }
   0x2   :  { %16 = vsyncpa [#allocation3], 0 }
   0x3   :  { %18 = vsyncpa [#allocation3 + $0x1], 0 }
   0x4   :  { %19 = vsyncpa [#allocation4], 0 }
   0x5   :  { %21 = vsyncpa [#allocation4 + $0x1], 0  ;;  %s1431_s17 = smov 0   ;;  %s1433_s18 = smov 0  }
   0x6   :  { %s1435_s19 = smov 0   ;;  %s1437_s20 = smov 0  }
   0x7   :  { %s1439_s21 = smov 0   ;;  %s1441_s22 = smov 0  }
   0x8 LB: > { %1719 = sst [smem:[#allocation8_spill]] %s1344_s17  ;;  %s1123_s23 = sadd.s32 4294967295, %s1364_s22   ;;  %s1364_s22 = sphi %s1441_s22, %s27_s22   ;;  %s1360_s21 = sphi %s1439_s21, %s1733_s21   ;;  %s1356_s20 = sphi %s1437_s20, %s1732_s20   ;;  %s1352_s19 = sphi %s1435_s19, %s1736_s19   ;;  %s1348_s18 = sphi %s1433_s18, %s1735_s18   ;;  %s1344_s17 = sphi %s1431_s17, %s1734_s17  }
   0x9   : > { %1720 = sst [smem:[#allocation9_spill]] %s1360_s21  ;;  %s1124_s24 = sadd.s32 4294967294, %s1364_s22  }
   0xa   : > { %s39_s25 = sadd.s32 1, %s1360_s21  ;;  %s48_s26 = sadd.s32 1, %s1352_s19 }
   0xb   : > { %p41_p0 = scmp.ge.s32.totalorder %s39_s25, 2  ;;  %p55_p1 = scmp.ne.s32.totalorder %s1352_s19, %s1348_s18 }
   0xc   : > { %p56_p2 = scmp.eq.s32.totalorder %s1364_s22, 0  ;;  %p61_p3 = scmp.ne.s32.totalorder %s1348_s18, %s1344_s17 }
   0xd   : > { %s1738_s25 = smov (%p41_p0, %s39_s25), 0  ;;  %p62_p5 = scmp.eq.s32.totalorder %s1123_s23, 0 }
   0xe   : > { %1721 = sst [smem:[#allocation10_spill]] %s1738_s25  ;;  %p1472_p4 = por %p56_p2, %p55_p1 }
   0xf   : > { %s43_s28 = ssub.s32 %s1360_s21, %s1738_s25  ;;  %p307_p6 = scmp.eq.s32.totalorder %s1123_s23, 1 }
  0x10   : > { %p46_p7 = scmp.eq.s32.totalorder %s43_s28, 0  ;;  %p1478_p8 = por %p62_p5, %p61_p3 }
  0x11   : > { %p1482_p9 = por %p307_p6, %p55_p1  ;;  %p313_p10 = scmp.eq.s32.totalorder %s1124_s24, 1 }
  0x12   : > { %s1487_s12 = scalar_select %p46_p7, %s1352_s19, %s48_s26  }
  0x13   : > { %s1724_s30 = scalar_select %p1482_p9, 1, 0 }
  0x14   : > { %1726 = sst [smem:[#allocation12_spill]] %s1487_s12  ;;  %p1489_p11 = por %p313_p10, %p61_p3 }
  0x15   : > { %1725 = sst [smem:[#allocation11_spill]] %s1724_s30  ;;  %p1126_p12 = scmp.ge.s32.totalorder %s1364_s22, 2 }
  0x16   : > { %p1186_p13 = scmp.lt.s32.totalorder %s1364_s22, 2  ;;  %s357_s14 = sand.u32 1, %s1352_s19  }
  0x17   : > { %s1127_s15 = sshll.u32 %s357_s14, 6  ;;  %s1171_s16 = sshll.u32 %s1360_s21, 6 }
  0x18   : > { %s368_s25 = scalar_lea.hbm %s1700_s0, %s1171_s16  ;;  %s361_s17 = scalar_lea.vmem [#allocation2], %s1127_s15 }
  0x19   : > { %s371_s30 = sshll.u32 %s361_s17, 4  ;;  %s369_s11 = sshll.u32 %s368_s25, 4  ;;  %s372_s30 = int_to_ptr.vmem [resolvable:$true] %s371_s30  ;;  %s370_s11 = int_to_ptr.hbm [resolvable:$true] %s369_s11 }
  0x1a   : > { %p1179_p0 = pnand %p1186_p13, %p1472_p4  ;;  %p1130_p1 = scmp.ge.s32.totalorder %s1364_s22, 1 }
  0x1b   : > { %s358_s24 = scalar_lea.sflag [#allocation3], %s357_s14  ;;  %s1366_s26 = smov 256  }
  0x1c   : > { %s1367_s12 = smov 16   ;;  %p394_p2 = scmp.lt.s32.totalorder %s1364_s22, 3 }
  0x1d   : > { %1181 = dma.hbm_to_vmem [thread:$0]  (!%p1179_p0), %s370_s11, 1024, %s372_s30, %s358_s24, %s1366_s26, %s1366_s26, %s1367_s12  }
  0x1e   : > { %p395_p3 = pnand %p1130_p1, %p394_p2 }
  0x1f   : > { %s1505_s21 = sand.u32 (!%p395_p3), 1, %s1348_s18  }
  0x20   : > { %398 = sbr.rel (%p395_p3) target bundleno = 986 (0x3da), region = 64  ;;  %s1131_s17 = sshll.u32 (!%p395_p3), %s1505_s21, 6 }
  0x21   : > { %s401_s25 = scalar_lea.sflag (!%p395_p3), [#allocation3], %s1505_s21  ;;  %s404_s27 = scalar_lea.vmem (!%p395_p3), [#allocation2], %s1131_s17 }
  0x25   : > { %1335 = dma.done.wait (%p1478_p8), %s401_s25, 1024  }
  0x26   : > { %1337 = vsyncadd (%p1478_p8), %s401_s25, 4294966272  ;;  %v1368_v0 = vmov 0   ;;  %v475_v1 = vld [vmem:[%s1704_s4 + $0x8] sm:$0xff]  ;;  %v1518_v2 = vld [vmem:[%s404_s27 + $0x30] sm:$0xff]  ;;  %vm486_vm0 = vcmask 261120   ;;  %vm557_vm1 = vcmask 130048  }
  0x27   : > { %1241 = vset.pattern.permute.xlu0 %v1368_v0  ;;  %1242 = vset.pattern.permute.xlu1 %v1368_v0  ;;  %v1520_v3 = vld [vmem:[%s404_s27 + $0x38] sm:$0xff]  ;;  %v1523_v4 = vld [vmem:[%s404_s27 + $0x20] sm:$0xff]  ;;  %v1525_v5 = vld [vmem:[%s404_s27 + $0x28] sm:$0xff]  ;;  %p454_p4 = scmp.lt.s32.totalorder %s1356_s20, 1  ;;  %vm720_vm10 = vcmask 64512   ;;  %vm907_vm11 = vcmask 523264  }
  0x28   : > { %1243 = vset.pattern.permute.xlu2 %v1368_v0  ;;  %483 = vperm.xlu0 %1241, %v475_v1   ;;  %v1528_v6 = vld [vmem:[%s404_s27 + $0x10] sm:$0xff]  ;;  %v1531_v7 = vld [vmem:[%s404_s27 + $0x18] sm:$0xff]  ;;  %v1534_v8 = vld [vmem:[%s404_s27] sm:$0xff]  ;;  %s1651_s15 = scalar_lea.vmem [#allocation5], %s1131_s17  ;;  %s1173_s17 = sshll.u32 %s1356_s20, 6 }
  0x29   : > { %505 = vmatpush.msra.mxu0 %v1518_v2  ;;  %528 = vmatpush.msra.mxu1 %v1520_v3  ;;  %v1537_v9 = vld [vmem:[%s404_s27 + $0x8] sm:$0xff]  ;;  %v472_v10 = vld [vmem:[%s1703_s3] sm:$0xff]  ;;  %v885_v19 = vld [vmem:[%s1710_s10 + $0x10] sm:$0xff]  ;;  %s1581_s25 = scalar_select %p454_p4, %s1356_s20, 1 }
  0x2a   : > { %v474_v11 = vld [vmem:[%s1704_s4] sm:$0xff]  ;;  %v473_v12 = vld [vmem:[%s1703_s3 + $0x8] sm:$0xff]  ;;  %s1728_s28 = sld [smem:[#allocation13_spill]]  ;;  %s1009_s26 = sshll.u32 %s1651_s15, 4  ;;  %s1010_s26 = int_to_ptr.vmem [resolvable:$true] %s1009_s26 }
  0x2b   : > { %506 = vmatpush.msra.mxu0 %v1523_v4  ;;  %529 = vmatpush.msra.mxu1 %v1525_v5  ;;  %v778_v13 = vld [vmem:[%s1708_s8 + $0x8] sm:$0xff]  ;;  %v545_v16 = vld [vmem:[%s1706_s6] sm:$0xff]  ;;  %s1133_s27 = sshll.u32 %s1581_s25, 3  ;;  %s1172_s12 = sshll.u32 %s1581_s25, 4 }
  0x2c   : > { %v884_v14 = vld [vmem:[%s1710_s10 + $0x8] sm:$0xff]  ;;  %v777_v17 = vld [vmem:[%s1708_s8] sm:$0xff]  ;;  %s457_s29 = scalar_lea.vmem %s1701_s1, %s1133_s27  ;;  %s462_s16 = scalar_lea.vmem %s1702_s2, %s1172_s12 }
  0x2d   : > { %507 = vmatpush.msra.mxu0 %v1528_v6  ;;  %530 = vmatpush.msra.mxu1 %v1531_v7  ;;  %v546_v15 = vld [vmem:[%s1706_s6 + $0x8] sm:$0xff]  ;;  %v543_v32 = vld [vmem:[%s1705_s5] sm:$0xff]  ;;  %s995_s20 = scalar_lea.sflag [#allocation4], %s1505_s21 }
  0x2e   : > { %554 = vperm.xlu1 %1242, %v546_v15   ;;  %v544_v34 = vld [vmem:[%s1705_s5 + $0x8] sm:$0xff]  ;;  %v614_v48 = vld [vmem:[%s457_s29] sm:$0xff] }
  0x2f   : > { %508 = vmatpush.msra.mxu0 %v1534_v8  ;;  %531 = vmatpush.msra.mxu1 %v1537_v9 }
  0x30   : > { %1136 = vmatmul.msk.f32.vlgmr.msra.gmra.mxu0 %vm486_vm0, %v472_v10  ;;  %1138 = vmatmul.msk.f32.vlgmr.msra.gmra.mxu1 %vm486_vm0, %v472_v10  ;;  %s1008_s24 = scalar_lea.hbm %s1728_s28, %s1173_s17  ;;  %s1302_s14 = scalar_lea.hbm %s1728_s28, 128 }
  0x31   : > { %478 = vperm.xlu0 %1241, %v474_v11   ;;  %s1011_s27 = sshll.u32 %s1008_s24, 4  ;;  %s1012_s27 = int_to_ptr.hbm [resolvable:$true] %s1011_s27 }
  0x32   : > { %s1296_s11 = sshra.s32 %s1012_s27, 4  ;;  %s1297_s11 = int_to_ptr.hbm [resolvable:$true] %s1296_s11 }
  0x33   : > { %s1298_s30 = scalar_lea.hbm %s1297_s11, 64  ;;  %p1303_p8 = scmp.lt.s32.totalorder %s1297_s11, %s1728_s28 }
  0x34   : > { %p1299_p5 = scmp.ne.s32.totalorder %s1297_s11, %s1298_s30  ;;  %p1304_p10 = scmp.lt.s32.totalorder %s1302_s14, %s1298_s30 }
  0x36   : > { %549 = vperm.xlu1 %1242, %v545_v16   ;;  %p1300_p6 = pnand %p1299_p5, %p1482_p9  ;;  %p1305_p13 = por %p1304_p10, %p1303_p8 }
  0x38   : > { %1137 = vmatmul.msk.f32.gmra.mxu0 %vm486_vm0, %v473_v12  ;;  %1139 = vmatmul.msk.f32.gmra.mxu1 %vm486_vm0, %v473_v12  ;;  %p1301_p7 = pneg %p1300_p6 }
  0x39   : > { %788 = vperm.xlu0 %1241, %v778_v13  }
  0x3a   : > { %p1306_p0 = pnand %p1305_p13, %p1301_p7 }
  0x3e   : > { %783 = vperm.xlu1 %1242, %v777_v17  }
  0x41   : > { %894 = vperm.xlu0 %1241, %v884_v14  }
  0x46   : > { %899 = vperm.xlu1 %1242, %v885_v19  }
  0x9a   : > { %v484_v18 = vpop.permute.xlu0 %483 }
  0xa0   : > { %v555_v35 = vpop.permute.xlu1 %554 }
  0xa3   : > { %v479_v22 = vpop.permute.xlu0 %478 }
  0xa8   : > { %v550_v38 = vpop.permute.xlu1 %549 }
  0xad   : > { %v510_v20 = vpop.f32.mrf.mxu0  ;;  %v533_v21 = vpop.f32.mrf.mxu1 }
  0xae   : > { %v511_v24 = vadd.f32 %v510_v20, %v479_v22  ;;  %v534_v27 = vadd.f32 %v533_v21, %v479_v22 }
  0xb0   : > { %v539_v31 = vmax.f32 %v511_v24, 0.0  ;;  %v540_v33 = vmax.f32 %v534_v27, 0.0 }
  0xb5   : > { %v513_v23 = vpop.f32.mrf.mxu0  ;;  %v536_v25 = vpop.f32.mrf.mxu1 }
  0xb6   : > { %v514_v26 = vadd.f32 %v513_v23, %v484_v18  ;;  %v537_v28 = vadd.f32 %v536_v25, %v484_v18 }
  0xb8   : > { %v541_v29 = vmax.f32 %v514_v26, 0.0  ;;  %v542_v30 = vmax.f32 %v537_v28, 0.0 }
  0xba   : > { %578 = vmatpush.msra.mxu2 %v541_v29  ;;  %601 = vmatpush.msra.mxu3 %v542_v30 }
  0xbc   : > { %579 = vmatpush.msra.mxu2 %v539_v31  ;;  %602 = vmatpush.msra.mxu3 %v540_v33 }
  0xbd   : > { %1140 = vmatmul.msk.f32.vlgmr.msra.gmra.mxu2 %vm557_vm1, %v543_v32  ;;  %1142 = vmatmul.msk.f32.vlgmr.msra.gmra.mxu3 %vm557_vm1, %v543_v32 }
  0xc5   : > { %1141 = vmatmul.msk.f32.gmra.mxu2 %vm557_vm1, %v544_v34  ;;  %1143 = vmatmul.msk.f32.gmra.mxu3 %vm557_vm1, %v544_v34 }
 0x140   : > { %v581_v36 = vpop.f32.mrf.mxu2  ;;  %v604_v37 = vpop.f32.mrf.mxu3 }
 0x141   : > { %v582_v40 = vadd.f32 %v581_v36, %v550_v38  ;;  %v605_v43 = vadd.f32 %v604_v37, %v550_v38 }
 0x143   : > { %v610_v47 = vmax.f32 %v582_v40, 0.0  ;;  %v611_v49 = vmax.f32 %v605_v43, 0.0 }
 0x148   : > { %v584_v39 = vpop.f32.mrf.mxu2  ;;  %v607_v42 = vpop.f32.mrf.mxu3 }
 0x149   : > { %v585_v41 = vadd.f32 %v584_v39, %v555_v35  ;;  %v608_v44 = vadd.f32 %v607_v42, %v555_v35 }
 0x14b   : > { %v612_v45 = vmax.f32 %v585_v41, 0.0  ;;  %v613_v46 = vmax.f32 %v608_v44, 0.0 }
 0x14d   : > { %632 = vmatpush.msrb.mxu2 %v612_v45  ;;  %652 = vmatpush.msrb.mxu3 %v613_v46 }
 0x14f   : > { %633 = vmatpush.msrb.mxu2 %v610_v47  ;;  %653 = vmatpush.msrb.mxu3 %v611_v49  ;;  %v718_v47 = vld [vmem:[%s462_s16] sm:$0xff]  ;;  %v719_v49 = vld [vmem:[%s462_s16 + $0x8] sm:$0xff] }
 0x150   : > { %1144 = vmatmul.msk.f32.vlgmr.msrb.gmra.mxu2 %vm557_vm1, %v614_v48  ;;  %1145 = vmatmul.msk.f32.vlgmr.msrb.gmra.mxu3 %vm557_vm1, %v614_v48 }
 0x1d3   : > { %v635_v50 = vpop.f32.mrf.mxu2  ;;  %v655_v52 = vpop.f32.mrf.mxu3 }
 0x1d4   : > { %v658_v51 = vrot.slane %v635_v50, 4  ;;  %v664_v53 = vrot.slane %v655_v52, 4 }
 0x1d6   : > { %v659_v54 = vmax.f32 %v635_v50, %v658_v51  ;;  %v665_v55 = vmax.f32 %v655_v52, %v664_v53  ;;  %v775_v51 = vld [vmem:[%s1707_s7 + $0x10] sm:$0xff]  ;;  %v776_v53 = vld [vmem:[%s1707_s7 + $0x18] sm:$0xff] }
 0x1d8   : > { %v660_v56 = vrot.slane %v659_v54, 2  ;;  %v666_v57 = vrot.slane %v665_v55, 2 }
 0x1da   : > { %v661_v58 = vmax.f32 %v659_v54, %v660_v56  ;;  %v667_v59 = vmax.f32 %v665_v55, %v666_v57 }
 0x1dc   : > { %v662_v60 = vrot.slane %v661_v58, 1  ;;  %v668_v61 = vrot.slane %v667_v59, 1 }
 0x1de   : > { %v663_v62 = vmax.f32 %v661_v58, %v662_v60  ;;  %v669_v63 = vmax.f32 %v667_v59, %v668_v61 }
 0x1e0   : > { %v670_v0 = vsub.f32 %v635_v50, %v663_v62  ;;  %v671_v1 = vsub.f32 %v655_v52, %v669_v63  ;;  %v886_v52 = vld [vmem:[%s1710_s10 + $0x18] sm:$0xff] }
 0x1e2   : > { %v672_v10 = vmul.f32 1.442695, %v670_v0  ;;  %v674_v11 = vmul.f32 1.442695, %v671_v1 }
 0x1e4   : > { %1244 = vpow2.f32 %v672_v10  ;;  %v789_v10 = vpop.permute.xlu0 %788 }
 0x1e5   : > { %1246 = vpow2.f32 %v674_v11 }
 0x1ea   : > { %v1245_v12 = vpop.eup %1244 }
 0x1eb   : > { %v1247_v13 = vpop.eup %1246  ;;  %v676_v14 = vrot.slane %v1245_v12, 4 }
 0x1ec   : > { %v682_v15 = vrot.slane %v1247_v13, 4 }
 0x1ed   : > { %v677_v16 = vadd.f32 %v1245_v12, %v676_v14 }
 0x1ee   : > { %v683_v17 = vadd.f32 %v1247_v13, %v682_v15  ;;  %v784_v15 = vpop.permute.xlu1 %783 }
 0x1ef   : > { %v678_v18 = vrot.slane %v677_v16, 2 }
 0x1f0   : > { %v684_v19 = vrot.slane %v683_v17, 2 }
 0x1f1   : > { %v679_v20 = vadd.f32 %v678_v18, %v677_v16 }
 0x1f2   : > { %v685_v21 = vadd.f32 %v684_v19, %v683_v17 }
 0x1f3   : > { %v680_v22 = vrot.slane %v679_v20, 1 }
 0x1f4   : > { %v686_v23 = vrot.slane %v685_v21, 1 }
 0x1f5   : > { %v681_v24 = vadd.f32 %v680_v22, %v679_v20 }
 0x1f6   : > { %v687_v25 = vadd.f32 %v686_v23, %v685_v21 }
 0x1f7   : > { %1248 = vrcp.f32 %v681_v24  ;;  %v699_v31 = vand.u32 2147483648, %v681_v24  ;;  %v697_v34 = vand.u32 2147483647, %v681_v24  ;;  %vm693_vm4 = vweird.f32 %v681_v24 }
 0x1f8   : > { %1250 = vrcp.f32 %v687_v25  ;;  %v714_v35 = vand.u32 2147483648, %v687_v25  ;;  %v712_v37 = vand.u32 2147483647, %v687_v25  ;;  %vm708_vm6 = vweird.f32 %v687_v25 }
 0x1f9   : > { %v700_v39 = vor.u32 1.1754944e-38, %v699_v31  ;;  %vm698_vm7 = vcmp.eq.f32.partialorder %v697_v34, 8.507059e+37 }
 0x1fa   : > { %v715_v42 = vor.u32 1.1754944e-38, %v714_v35  ;;  %vm713_vm9 = vcmp.eq.f32.partialorder %v712_v37, 8.507059e+37  ;;  %v895_v37 = vpop.permute.xlu0 %894 }
 0x1fd   : > { %v1249_v26 = vpop.eup %1248 }
 0x1fe   : > { %v1251_v27 = vpop.eup %1250  ;;  %v689_v28 = vmul.f32 %v1249_v26, %v681_v24  ;;  %vm694_vm2 = vweird.f32 %v1249_v26 }
 0x1ff   : > { %v704_v29 = vmul.f32 %v1251_v27, %v687_v25  ;;  %vm709_vm3 = vweird.f32 %v1251_v27  ;;  %vm695_vm5 = vmor %vm693_vm4, %vm694_vm2  ;;  %v879_v25 = vld [vmem:[%s1709_s9] sm:$0xff] }
 0x200   : > { %v690_v30 = vsub.f32 1.0, %v689_v28  ;;  %vm710_vm8 = vmor %vm708_vm6, %vm709_vm3  ;;  %v881_v28 = vld [vmem:[%s1709_s9 + $0x10] sm:$0xff] }
 0x201   : > { %v705_v32 = vsub.f32 1.0, %v704_v29  ;;  %v882_v29 = vld [vmem:[%s1709_s9 + $0x18] sm:$0xff] }
 0x202   : > { %v691_v33 = vmul.f32 %v1249_v26, %v690_v30 }
 0x203   : > { %v706_v36 = vmul.f32 %v1251_v27, %v705_v32 }
 0x204   : > { %v692_v38 = vadd.f32 %v1249_v26, %v691_v33 }
 0x205   : > { %v707_v40 = vadd.f32 %v1251_v27, %v706_v36 }
 0x206   : > { %v696_v41 = vsel %vm695_vm5, %v1249_v26, %v692_v38 }
 0x207   : > { %v701_v43 = vsel %vm698_vm7, %v700_v39, %v696_v41  ;;  %v711_v44 = vsel %vm710_vm8, %v1251_v27, %v707_v40  ;;  %v880_v27 = vld [vmem:[%s1709_s9 + $0x8] sm:$0xff] }
 0x208   : > { %v702_v45 = vmul.f32 %v1245_v12, %v701_v43  ;;  %v716_v46 = vsel %vm713_vm9, %v715_v42, %v711_v44  ;;  %v900_v44 = vpop.permute.xlu1 %899 }
 0x209   : > { %v717_v48 = vmul.f32 %v1247_v13, %v716_v46 }
 0x20a   : > { %742 = vmatpush.msrb.mxu0 %v702_v45 }
 0x20b   : > { %765 = vmatpush.msrb.mxu1 %v717_v48  ;;  %1146 = vmatmul.msk.f32.vlgmr.msrb.gmra.mxu0 %vm720_vm10, %v718_v47 }
 0x20c   : > { %1148 = vmatmul.msk.f32.vlgmr.msrb.gmra.mxu1 %vm720_vm10, %v718_v47  ;;  %928 = vmatpush.msra.mxu0 %v1518_v2 }
 0x20d   : > { %957 = vmatpush.msra.mxu1 %v1520_v3  ;;  %v780_v3 = vld [vmem:[%s1708_s8 + $0x18] sm:$0xff] }
 0x20e   : > { %929 = vmatpush.msra.mxu0 %v1523_v4  ;;  %798 = vperm.xlu2 %1243, %v780_v3  }
 0x20f   : > { %958 = vmatpush.msra.mxu1 %v1525_v5 }
 0x210   : > { %930 = vmatpush.msra.mxu0 %v1528_v6  ;;  %v773_v6 = vld [vmem:[%s1707_s7] sm:$0xff] }
 0x211   : > { %959 = vmatpush.msra.mxu1 %v1531_v7  ;;  %v779_v7 = vld [vmem:[%s1708_s8 + $0x10] sm:$0xff] }
 0x212   : > { %931 = vmatpush.msra.mxu0 %v1534_v8  ;;  %v774_v8 = vld [vmem:[%s1707_s7 + $0x8] sm:$0xff] }
 0x213   : > { %1147 = vmatmul.msk.f32.gmra.mxu0 %vm720_vm10, %v719_v49  ;;  %960 = vmatpush.msra.mxu1 %v1537_v9  ;;  %v883_v9 = vld [vmem:[%s1710_s10] sm:$0xff] }
 0x214   : > { %1149 = vmatmul.msk.f32.gmra.mxu1 %vm720_vm10, %v719_v49 }
 0x216   : > { %793 = vperm.xlu2 %1243, %v779_v7  }
 0x21e   : > { %889 = vperm.xlu2 %1243, %v883_v9  }
 0x226   : > { %904 = vperm.xlu2 %1243, %v886_v52  }
 0x268   : > { %v799_v58 = vpop.permute.xlu2 %798 }
 0x270   : > { %v794_v61 = vpop.permute.xlu2 %793 }
 0x278   : > { %v890_v30 = vpop.permute.xlu2 %889 }
 0x288   : > { %v744_v2 = vpop.f32.mrf.mxu0 }
 0x289   : > { %v767_v50 = vpop.f32.mrf.mxu1 }
 0x290   : > { %v747_v4 = vpop.f32.mrf.mxu0 }
 0x291   : > { %v770_v5 = vpop.f32.mrf.mxu1  ;;  %827 = vmatpush.msra.mxu2 %v747_v4 }
 0x292   : > { %856 = vmatpush.msra.mxu3 %v770_v5 }
 0x293   : > { %828 = vmatpush.msra.mxu2 %v744_v2 }
 0x294   : > { %857 = vmatpush.msra.mxu3 %v767_v50  ;;  %1150 = vmatmul.msk.f32.vlgmr.msra.gmra.mxu2 %vm557_vm1, %v773_v6  ;;  %v905_v50 = vpop.permute.xlu2 %904 }
 0x295   : > { %1154 = vmatmul.msk.f32.vlgmr.msra.gmra.mxu3 %vm557_vm1, %v773_v6 }
 0x29c   : > { %1151 = vmatmul.msk.f32.gmra.mxu2 %vm557_vm1, %v774_v8 }
 0x29d   : > { %1155 = vmatmul.msk.f32.gmra.mxu3 %vm557_vm1, %v774_v8 }
 0x2a4   : > { %1152 = vmatmul.msk.f32.gmra.mxu2 %vm557_vm1, %v775_v51 }
 0x2a5   : > { %1156 = vmatmul.msk.f32.gmra.mxu3 %vm557_vm1, %v775_v51 }
 0x2ac   : > { %1153 = vmatmul.msk.f32.gmra.mxu2 %vm557_vm1, %v776_v53 }
 0x2ad   : > { %1157 = vmatmul.msk.f32.gmra.mxu3 %vm557_vm1, %v776_v53 }
 0x317   : > { %v830_v54 = vpop.f32.mrf.mxu2 }
 0x318   : > { %v859_v55 = vpop.f32.mrf.mxu3  ;;  %v831_v18 = vadd.f32 %v830_v54, %v784_v15 }
 0x319   : > { %v860_v20 = vadd.f32 %v859_v55, %v784_v15 }
 0x31a   : > { %v871_v24 = vmax.f32 %v831_v18, 0.0 }
 0x31b   : > { %v872_v26 = vmax.f32 %v860_v20, 0.0 }
 0x31f   : > { %v833_v56 = vpop.f32.mrf.mxu2 }
 0x320   : > { %v862_v57 = vpop.f32.mrf.mxu3  ;;  %v834_v13 = vadd.f32 %v833_v56, %v789_v10 }
 0x321   : > { %v863_v16 = vadd.f32 %v862_v57, %v789_v10 }
 0x322   : > { %v873_v22 = vmax.f32 %v834_v13, 0.0 }
 0x323   : > { %v874_v23 = vmax.f32 %v863_v16, 0.0 }
 0x327   : > { %v836_v59 = vpop.f32.mrf.mxu2 }
 0x328   : > { %v865_v60 = vpop.f32.mrf.mxu3  ;;  %v837_v63 = vadd.f32 %v836_v59, %v794_v61 }
 0x329   : > { %v866_v11 = vadd.f32 %v865_v60, %v794_v61 }
 0x32a   : > { %v875_v19 = vmax.f32 %v837_v63, 0.0 }
 0x32b   : > { %v876_v21 = vmax.f32 %v866_v11, 0.0 }
 0x32f   : > { %v839_v62 = vpop.f32.mrf.mxu2 }
 0x330   : > { %v840_v0 = vadd.f32 %v839_v62, %v799_v58  ;;  %v868_v1 = vpop.f32.mrf.mxu3 }
 0x331   : > { %v869_v12 = vadd.f32 %v868_v1, %v799_v58 }
 0x332   : > { %v877_v14 = vmax.f32 %v840_v0, 0.0 }
 0x333   : > { %v878_v17 = vmax.f32 %v869_v12, 0.0 }
 0x334   : > { %932 = vmatpush.msra.mxu0 %v877_v14 }
 0x335   : > { %961 = vmatpush.msra.mxu1 %v878_v17 }
 0x336   : > { %933 = vmatpush.msra.mxu0 %v875_v19 }
 0x337   : > { %962 = vmatpush.msra.mxu1 %v876_v21 }
 0x338   : > { %934 = vmatpush.msra.mxu0 %v873_v22 }
 0x339   : > { %963 = vmatpush.msra.mxu1 %v874_v23 }
 0x33a   : > { %935 = vmatpush.msra.mxu0 %v871_v24 }
 0x33b   : > { %964 = vmatpush.msra.mxu1 %v872_v26  ;;  %1158 = vmatmul.msk.f32.vlgmr.msra.gmra.mxu0 %vm907_vm11, %v879_v25 }
 0x33c   : > { %1162 = vmatmul.msk.f32.vlgmr.msra.gmra.mxu1 %vm907_vm11, %v879_v25 }
 0x343   : > { %1159 = vmatmul.msk.f32.gmra.mxu0 %vm907_vm11, %v880_v27 }
 0x344   : > { %1163 = vmatmul.msk.f32.gmra.mxu1 %vm907_vm11, %v880_v27 }
 0x34b   : > { %1160 = vmatmul.msk.f32.gmra.mxu0 %vm907_vm11, %v881_v28 }
 0x34c   : > { %1164 = vmatmul.msk.f32.gmra.mxu1 %vm907_vm11, %v881_v28 }
 0x353   : > { %1161 = vmatmul.msk.f32.gmra.mxu0 %vm907_vm11, %v882_v29 }
 0x354   : > { %1165 = vmatmul.msk.f32.gmra.mxu1 %vm907_vm11, %v882_v29 }
 0x3b8   : > { %v937_v31 = vpop.f32.mrf.mxu0 }
 0x3b9   : > { %v938_v32 = vadd.f32 %v937_v31, %v890_v30  ;;  %v966_v33 = vpop.f32.mrf.mxu1 }
 0x3ba   : > { %v967_v34 = vadd.f32 %v966_v33, %v890_v30 }
 0x3bb   : > { %v978_v35 = vmax.f32 %v938_v32, 0.0 }
 0x3bc   : > { %v979_v36 = vmax.f32 %v967_v34, 0.0 }
 0x3bd   : > { %986 = vst [vmem:[%s1651_s15] sm:$0xff] %v978_v35 }
 0x3be   : > { %987 = vst [vmem:[%s1651_s15 + $0x8] sm:$0xff] %v979_v36 }
 0x3c0   : > { %v940_v38 = vpop.f32.mrf.mxu0 }
 0x3c1   : > { %v941_v39 = vadd.f32 %v940_v38, %v895_v37  ;;  %v969_v40 = vpop.f32.mrf.mxu1 }
 0x3c2   : > { %v970_v41 = vadd.f32 %v969_v40, %v895_v37 }
 0x3c3   : > { %v980_v42 = vmax.f32 %v941_v39, 0.0 }
 0x3c4   : > { %v981_v43 = vmax.f32 %v970_v41, 0.0 }
 0x3c5   : > { %988 = vst [vmem:[%s1651_s15 + $0x10] sm:$0xff] %v980_v42 }
 0x3c6   : > { %989 = vst [vmem:[%s1651_s15 + $0x18] sm:$0xff] %v981_v43 }
 0x3c8   : > { %v943_v45 = vpop.f32.mrf.mxu0 }
 0x3c9   : > { %v944_v46 = vadd.f32 %v943_v45, %v900_v44  ;;  %v972_v47 = vpop.f32.mrf.mxu1 }
 0x3ca   : > { %v973_v48 = vadd.f32 %v972_v47, %v900_v44 }
 0x3cb   : > { %v982_v49 = vmax.f32 %v944_v46, 0.0 }
 0x3cc   : > { %v983_v2 = vmax.f32 %v973_v48, 0.0 }
 0x3cd   : > { %990 = vst [vmem:[%s1651_s15 + $0x20] sm:$0xff] %v982_v49 }
 0x3ce   : > { %991 = vst [vmem:[%s1651_s15 + $0x28] sm:$0xff] %v983_v2 }
 0x3d0   : > { %v946_v3 = vpop.f32.mrf.mxu0 }
 0x3d1   : > { %v947_v4 = vadd.f32 %v946_v3, %v905_v50  ;;  %v975_v5 = vpop.f32.mrf.mxu1 }
 0x3d2   : > { %v976_v6 = vadd.f32 %v975_v5, %v905_v50 }
 0x3d3   : > { %v984_v7 = vmax.f32 %v947_v4, 0.0 }
 0x3d4   : > { %v985_v8 = vmax.f32 %v976_v6, 0.0 }
 0x3d5   : > { %992 = vst [vmem:[%s1651_s15 + $0x30] sm:$0xff] %v984_v7 }
 0x3d6   : > { %993 = vst [vmem:[%s1651_s15 + $0x38] sm:$0xff] %v985_v8 }
 0x3d7   : > { %1309 = shalt.err (!%p1306_p0)
}
 0x3d8   : > { %s1369_s21 = smov 256   ;;  %s1370_s15 = smov 16  }
 0x3d9   : > { %1176 = dma.vmem_to_hbm [thread:$0]  (%p1482_p9), %s1010_s26, 1024, %s1012_s27, %s995_s20, %s1369_s21, %s1369_s21, %s1370_s15  }
 0x3da PF: > { %s1730_s23 = sld [smem:[#allocation8_spill]]  ;;  %p1183_p1 = pnand %p1126_p12, %p1489_p11 }
 0x3dc   : > { %p1184_p2 = pneg %p1183_p1 }
 0x3e0   : > { %s1026_s24 = sand.u32 1, %s1730_s23  }
 0x3e1   : > { %s1027_s29 = scalar_lea.sflag [#allocation4], %s1026_s24 }
 0x3e2   : > { %1339 = dma.done.wait (%p1184_p2), %s1027_s29, 1024  }
 0x3e3   : > { %1341 = vsyncadd (%p1184_p2), %s1027_s29, 4294966272  ;;  %s27_s22 = sadd.s32 1, %s1364_s22   ;;  %s1731_s11 = sld [smem:[#allocation12_spill]] }
 0x3e4   : > { %p24_p3 = scmp.ge.s32.totalorder %s27_s22, 4   ;;  %s1732_s20 = sld [smem:[#allocation9_spill]] }
 0x3e5   : > { %s1733_s21 = sld [smem:[#allocation10_spill]]  ;;  %s1734_s17 = smov %s1348_s18 }
 0x3e6   : > { %s1735_s18 = smov %s1352_s19  ;;  %26 = sbr.rel (!%p24_p3) target bundleno = 8 (0x8), region = 115 }
 0x3e9   : > { %s1736_s19 = smov %s1731_s11 }
 0x3eb   :  { %1033 = vsyncpa [#allocation3], 1 }
 0x3ec   :  { %1035 = vsyncpa [#allocation3 + $0x1], 1 }
 0x3ed   :  { %1036 = vsyncpa [#allocation4], 1 }
 0x3ee   :  { %1038 = vsyncpa [#allocation4 + $0x1], 1 }

// kernel: tpu_custom_call.1
= control target key start
LH: loop header
LB: loop body
LE: loop exit
PB: predicated region body
PF: predicated region fallthrough
CT: control target
= control target key end

     0   :  { %s1700_s0 = inlined_call_operand.hbm [shape: f32[2,32,256], index: 0, kind: input, shape index: {}]   ;;  %s1701_s1 = inlined_call_operand.vmem [shape: f32[2,8,16], index: 1, kind: input, shape index: {}]   ;;  %s1702_s2 = inlined_call_operand.vmem [shape: f32[2,16,8], index: 2, kind: input, shape index: {}]   ;;  %s1703_s3 = inlined_call_operand.vmem [shape: f32[16,32], index: 3, kind: input, shape index: {}]   ;;  %s1704_s4 = inlined_call_operand.vmem [shape: f32[16,1], index: 4, kind: input, shape index: {}]   ;;  %s1705_s5 = inlined_call_operand.vmem [shape: f32[16,16], index: 5, kind: input, shape index: {}]   ;;  %s1706_s6 = inlined_call_operand.vmem [shape: f32[16,1], index: 6, kind: input, shape index: {}]   ;;  %s1707_s7 = inlined_call_operand.vmem [shape: f32[32,16], index: 7, kind: input, shape index: {}]   ;;  %s1708_s8 = inlined_call_operand.vmem [shape: f32[32,1], index: 8, kind: input, shape index: {}]   ;;  %s1709_s9 = inlined_call_operand.vmem [shape: f32[32,64], index: 9, kind: input, shape index: {}]   ;;  %s1710_s10 = inlined_call_operand.vmem [shape: f32[32,1], index: 10, kind: input, shape index: {}]   ;;  %s1711_s11 = inlined_call_operand.hbm [shape: f32[2,32,256], index: 11, kind: output, shape index: {}]  }
   0x1   :  { %1718 = sst [smem:[#allocation13_spill]] %s1711_s11 }
   0x2   :  { %16 = vsyncpa [#allocation3], 0 }
   0x3   :  { %18 = vsyncpa [#allocation3 + $0x1], 0 }
   0x4   :  { %19 = vsyncpa [#allocation4], 0 }
   0x5   :  { %21 = vsyncpa [#allocation4 + $0x1], 0  ;;  %s1431_s17 = smov 0   ;;  %s1433_s18 = smov 0  }
   0x6   :  { %s1435_s19 = smov 0   ;;  %s1437_s20 = smov 0  }
   0x7   :  { %s1439_s21 = smov 0   ;;  %s1441_s22 = smov 0  }
   0x8 LB: > { %1719 = sst [smem:[#allocation8_spill]] %s1344_s17  ;;  %s1123_s23 = sadd.s32 4294967295, %s1364_s22   ;;  %s1364_s22 = sphi %s1441_s22, %s27_s22   ;;  %s1360_s21 = sphi %s1439_s21, %s1733_s21   ;;  %s1356_s20 = sphi %s1437_s20, %s1732_s20   ;;  %s1352_s19 = sphi %s1435_s19, %s1736_s19   ;;  %s1348_s18 = sphi %s1433_s18, %s1735_s18   ;;  %s1344_s17 = sphi %s1431_s17, %s1734_s17  }
   0x9   : > { %1720 = sst [smem:[#allocation9_spill]] %s1360_s21  ;;  %s1124_s24 = sadd.s32 4294967294, %s1364_s22  }
   0xa   : > { %s39_s25 = sadd.s32 1, %s1360_s21  ;;  %s48_s26 = sadd.s32 1, %s1352_s19 }
   0xb   : > { %p41_p0 = scmp.ge.s32.totalorder %s39_s25, 2  ;;  %p55_p1 = scmp.ne.s32.totalorder %s1352_s19, %s1348_s18 }
   0xc   : > { %p56_p2 = scmp.eq.s32.totalorder %s1364_s22, 0  ;;  %p61_p3 = scmp.ne.s32.totalorder %s1348_s18, %s1344_s17 }
   0xd   : > { %s1738_s25 = smov (%p41_p0, %s39_s25), 0  ;;  %p62_p5 = scmp.eq.s32.totalorder %s1123_s23, 0 }
   0xe   : > { %1721 = sst [smem:[#allocation10_spill]] %s1738_s25  ;;  %p1472_p4 = por %p56_p2, %p55_p1 }
   0xf   : > { %s43_s28 = ssub.s32 %s1360_s21, %s1738_s25  ;;  %p307_p6 = scmp.eq.s32.totalorder %s1123_s23, 1 }
  0x10   : > { %p46_p7 = scmp.eq.s32.totalorder %s43_s28, 0  ;;  %p1478_p8 = por %p62_p5, %p61_p3 }
  0x11   : > { %p1482_p9 = por %p307_p6, %p55_p1  ;;  %p313_p10 = scmp.eq.s32.totalorder %s1124_s24, 1 }
  0x12   : > { %s1487_s12 = scalar_select %p46_p7, %s1352_s19, %s48_s26  }
  0x13   : > { %s1724_s30 = scalar_select %p1482_p9, 1, 0 }
  0x14   : > { %1726 = sst [smem:[#allocation12_spill]] %s1487_s12  ;;  %p1489_p11 = por %p313_p10, %p61_p3 }
  0x15   : > { %1725 = sst [smem:[#allocation11_spill]] %s1724_s30  ;;  %p1126_p12 = scmp.ge.s32.totalorder %s1364_s22, 2 }
  0x16   : > { %p1186_p13 = scmp.lt.s32.totalorder %s1364_s22, 2  ;;  %s357_s14 = sand.u32 1, %s1352_s19  }
  0x17   : > { %s1127_s15 = sshll.u32 %s357_s14, 6  ;;  %s1171_s16 = sshll.u32 %s1360_s21, 6 }
  0x18   : > { %s368_s25 = scalar_lea.hbm %s1700_s0, %s1171_s16  ;;  %s361_s17 = scalar_lea.vmem [#allocation2], %s1127_s15 }
  0x19   : > { %s371_s30 = sshll.u32 %s361_s17, 4  ;;  %s369_s11 = sshll.u32 %s368_s25, 4  ;;  %s372_s30 = int_to_ptr.vmem [resolvable:$true] %s371_s30  ;;  %s370_s11 = int_to_ptr.hbm [resolvable:$true] %s369_s11 }
  0x1a   : > { %p1179_p0 = pnand %p1186_p13, %p1472_p4  ;;  %p1130_p1 = scmp.ge.s32.totalorder %s1364_s22, 1 }
  0x1b   : > { %s358_s24 = scalar_lea.sflag [#allocation3], %s357_s14  ;;  %s1366_s26 = smov 256  }
  0x1c   : > { %s1367_s12 = smov 16   ;;  %p394_p2 = scmp.lt.s32.totalorder %s1364_s22, 3 }
  0x1d   : > { %1181 = dma.hbm_to_vmem [thread:$0]  (!%p1179_p0), %s370_s11, 1024, %s372_s30, %s358_s24, %s1366_s26, %s1366_s26, %s1367_s12  }
  0x1e   : > { %p395_p3 = pnand %p1130_p1, %p394_p2 }
  0x1f   : > { %s1505_s21 = sand.u32 (!%p395_p3), 1, %s1348_s18  }
  0x20   : > { %398 = sbr.rel (%p395_p3) target bundleno = 986 (0x3da), region = 64  ;;  %s1131_s17 = sshll.u32 (!%p395_p3), %s1505_s21, 6 }
  0x21   : > { %s401_s25 = scalar_lea.sflag (!%p395_p3), [#allocation3], %s1505_s21  ;;  %s404_s27 = scalar_lea.vmem (!%p395_p3), [#allocation2], %s1131_s17 }
  0x25   : > { %1335 = dma.done.wait (%p1478_p8), %s401_s25, 1024  }
  0x26   : > { %1337 = vsyncadd (%p1478_p8), %s401_s25, 4294966272  ;;  %v1368_v0 = vmov 0   ;;  %v475_v1 = vld [vmem:[%s1704_s4 + $0x8] sm:$0xff]  ;;  %v1518_v2 = vld [vmem:[%s404_s27 + $0x30] sm:$0xff]  ;;  %vm486_vm0 = vcmask 261120   ;;  %vm557_vm1 = vcmask 130048  }
  0x27   : > { %1241 = vset.pattern.permute.xlu0 %v1368_v0  ;;  %1242 = vset.pattern.permute.xlu1 %v1368_v0  ;;  %v1520_v3 = vld [vmem:[%s404_s27 + $0x38] sm:$0xff]  ;;  %v1523_v4 = vld [vmem:[%s404_s27 + $0x20] sm:$0xff]  ;;  %v1525_v5 = vld [vmem:[%s404_s27 + $0x28] sm:$0xff]  ;;  %p454_p4 = scmp.lt.s32.totalorder %s1356_s20, 1  ;;  %vm720_vm10 = vcmask 64512   ;;  %vm907_vm11 = vcmask 523264  }
  0x28   : > { %1243 = vset.pattern.permute.xlu2 %v1368_v0  ;;  %483 = vperm.xlu0 %1241, %v475_v1   ;;  %v1528_v6 = vld [vmem:[%s404_s27 + $0x10] sm:$0xff]  ;;  %v1531_v7 = vld [vmem:[%s404_s27 + $0x18] sm:$0xff]  ;;  %v1534_v8 = vld [vmem:[%s404_s27] sm:$0xff]  ;;  %s1651_s15 = scalar_lea.vmem [#allocation5], %s1131_s17  ;;  %s1173_s17 = sshll.u32 %s1356_s20, 6 }
  0x29   : > { %505 = vmatpush.msra.mxu0 %v1518_v2  ;;  %528 = vmatpush.msra.mxu1 %v1520_v3  ;;  %v1537_v9 = vld [vmem:[%s404_s27 + $0x8] sm:$0xff]  ;;  %v472_v10 = vld [vmem:[%s1703_s3] sm:$0xff]  ;;  %v885_v19 = vld [vmem:[%s1710_s10 + $0x10] sm:$0xff]  ;;  %s1581_s25 = scalar_select %p454_p4, %s1356_s20, 1 }
  0x2a   : > { %v474_v11 = vld [vmem:[%s1704_s4] sm:$0xff]  ;;  %v473_v12 = vld [vmem:[%s1703_s3 + $0x8] sm:$0xff]  ;;  %s1728_s28 = sld [smem:[#allocation13_spill]]  ;;  %s1009_s26 = sshll.u32 %s1651_s15, 4  ;;  %s1010_s26 = int_to_ptr.vmem [resolvable:$true] %s1009_s26 }
  0x2b   : > { %506 = vmatpush.msra.mxu0 %v1523_v4  ;;  %529 = vmatpush.msra.mxu1 %v1525_v5  ;;  %v778_v13 = vld [vmem:[%s1708_s8 + $0x8] sm:$0xff]  ;;  %v545_v16 = vld [vmem:[%s1706_s6] sm:$0xff]  ;;  %s1133_s27 = sshll.u32 %s1581_s25, 3  ;;  %s1172_s12 = sshll.u32 %s1581_s25, 4 }
  0x2c   : > { %v884_v14 = vld [vmem:[%s1710_s10 + $0x8] sm:$0xff]  ;;  %v777_v17 = vld [vmem:[%s1708_s8] sm:$0xff]  ;;  %s457_s29 = scalar_lea.vmem %s1701_s1, %s1133_s27  ;;  %s462_s16 = scalar_lea.vmem %s1702_s2, %s1172_s12 }
  0x2d   : > { %507 = vmatpush.msra.mxu0 %v1528_v6  ;;  %530 = vmatpush.msra.mxu1 %v1531_v7  ;;  %v546_v15 = vld [vmem:[%s1706_s6 + $0x8] sm:$0xff]  ;;  %v543_v32 = vld [vmem:[%s1705_s5] sm:$0xff]  ;;  %s995_s20 = scalar_lea.sflag [#allocation4], %s1505_s21 }
  0x2e   : > { %554 = vperm.xlu1 %1242, %v546_v15   ;;  %v544_v34 = vld [vmem:[%s1705_s5 + $0x8] sm:$0xff]  ;;  %v614_v48 = vld [vmem:[%s457_s29] sm:$0xff] }
  0x2f   : > { %508 = vmatpush.msra.mxu0 %v1534_v8  ;;  %531 = vmatpush.msra.mxu1 %v1537_v9 }
  0x30   : > { %1136 = vmatmul.msk.f32.vlgmr.msra.gmra.mxu0 %vm486_vm0, %v472_v10  ;;  %1138 = vmatmul.msk.f32.vlgmr.msra.gmra.mxu1 %vm486_vm0, %v472_v10  ;;  %s1008_s24 = scalar_lea.hbm %s1728_s28, %s1173_s17  ;;  %s1302_s14 = scalar_lea.hbm %s1728_s28, 128 }
  0x31   : > { %478 = vperm.xlu0 %1241, %v474_v11   ;;  %s1011_s27 = sshll.u32 %s1008_s24, 4  ;;  %s1012_s27 = int_to_ptr.hbm [resolvable:$true] %s1011_s27 }
  0x32   : > { %s1296_s11 = sshra.s32 %s1012_s27, 4  ;;  %s1297_s11 = int_to_ptr.hbm [resolvable:$true] %s1296_s11 }
  0x33   : > { %s1298_s30 = scalar_lea.hbm %s1297_s11, 64  ;;  %p1303_p8 = scmp.lt.s32.totalorder %s1297_s11, %s1728_s28 }
  0x34   : > { %p1299_p5 = scmp.ne.s32.totalorder %s1297_s11, %s1298_s30  ;;  %p1304_p10 = scmp.lt.s32.totalorder %s1302_s14, %s1298_s30 }
  0x36   : > { %549 = vperm.xlu1 %1242, %v545_v16   ;;  %p1300_p6 = pnand %p1299_p5, %p1482_p9  ;;  %p1305_p13 = por %p1304_p10, %p1303_p8 }
  0x38   : > { %1137 = vmatmul.msk.f32.gmra.mxu0 %vm486_vm0, %v473_v12  ;;  %1139 = vmatmul.msk.f32.gmra.mxu1 %vm486_vm0, %v473_v12  ;;  %p1301_p7 = pneg %p1300_p6 }
  0x39   : > { %788 = vperm.xlu0 %1241, %v778_v13  }
  0x3a   : > { %p1306_p0 = pnand %p1305_p13, %p1301_p7 }
  0x3e   : > { %783 = vperm.xlu1 %1242, %v777_v17  }
  0x41   : > { %894 = vperm.xlu0 %1241, %v884_v14  }
  0x46   : > { %899 = vperm.xlu1 %1242, %v885_v19  }
  0x9a   : > { %v484_v18 = vpop.permute.xlu0 %483 }
  0xa0   : > { %v555_v35 = vpop.permute.xlu1 %554 }
  0xa3   : > { %v479_v22 = vpop.permute.xlu0 %478 }
  0xa8   : > { %v550_v38 = vpop.permute.xlu1 %549 }
  0xad   : > { %v510_v20 = vpop.f32.mrf.mxu0  ;;  %v533_v21 = vpop.f32.mrf.mxu1 }
  0xae   : > { %v511_v24 = vadd.f32 %v510_v20, %v479_v22  ;;  %v534_v27 = vadd.f32 %v533_v21, %v479_v22 }
  0xb0   : > { %v539_v31 = vmax.f32 %v511_v24, 0.0  ;;  %v540_v33 = vmax.f32 %v534_v27, 0.0 }
  0xb5   : > { %v513_v23 = vpop.f32.mrf.mxu0  ;;  %v536_v25 = vpop.f32.mrf.mxu1 }
  0xb6   : > { %v514_v26 = vadd.f32 %v513_v23, %v484_v18  ;;  %v537_v28 = vadd.f32 %v536_v25, %v484_v18 }
  0xb8   : > { %v541_v29 = vmax.f32 %v514_v26, 0.0  ;;  %v542_v30 = vmax.f32 %v537_v28, 0.0 }
  0xba   : > { %578 = vmatpush.msra.mxu2 %v541_v29  ;;  %601 = vmatpush.msra.mxu3 %v542_v30 }
  0xbc   : > { %579 = vmatpush.msra.mxu2 %v539_v31  ;;  %602 = vmatpush.msra.mxu3 %v540_v33 }
  0xbd   : > { %1140 = vmatmul.msk.f32.vlgmr.msra.gmra.mxu2 %vm557_vm1, %v543_v32  ;;  %1142 = vmatmul.msk.f32.vlgmr.msra.gmra.mxu3 %vm557_vm1, %v543_v32 }
  0xc5   : > { %1141 = vmatmul.msk.f32.gmra.mxu2 %vm557_vm1, %v544_v34  ;;  %1143 = vmatmul.msk.f32.gmra.mxu3 %vm557_vm1, %v544_v34 }
 0x140   : > { %v581_v36 = vpop.f32.mrf.mxu2  ;;  %v604_v37 = vpop.f32.mrf.mxu3 }
 0x141   : > { %v582_v40 = vadd.f32 %v581_v36, %v550_v38  ;;  %v605_v43 = vadd.f32 %v604_v37, %v550_v38 }
 0x143   : > { %v610_v47 = vmax.f32 %v582_v40, 0.0  ;;  %v611_v49 = vmax.f32 %v605_v43, 0.0 }
 0x148   : > { %v584_v39 = vpop.f32.mrf.mxu2  ;;  %v607_v42 = vpop.f32.mrf.mxu3 }
 0x149   : > { %v585_v41 = vadd.f32 %v584_v39, %v555_v35  ;;  %v608_v44 = vadd.f32 %v607_v42, %v555_v35 }
 0x14b   : > { %v612_v45 = vmax.f32 %v585_v41, 0.0  ;;  %v613_v46 = vmax.f32 %v608_v44, 0.0 }
 0x14d   : > { %632 = vmatpush.msrb.mxu2 %v612_v45  ;;  %652 = vmatpush.msrb.mxu3 %v613_v46 }
 0x14f   : > { %633 = vmatpush.msrb.mxu2 %v610_v47  ;;  %653 = vmatpush.msrb.mxu3 %v611_v49  ;;  %v718_v47 = vld [vmem:[%s462_s16] sm:$0xff]  ;;  %v719_v49 = vld [vmem:[%s462_s16 + $0x8] sm:$0xff] }
 0x150   : > { %1144 = vmatmul.msk.f32.vlgmr.msrb.gmra.mxu2 %vm557_vm1, %v614_v48  ;;  %1145 = vmatmul.msk.f32.vlgmr.msrb.gmra.mxu3 %vm557_vm1, %v614_v48 }
 0x1d3   : > { %v635_v50 = vpop.f32.mrf.mxu2  ;;  %v655_v52 = vpop.f32.mrf.mxu3 }
 0x1d4   : > { %v658_v51 = vrot.slane %v635_v50, 4  ;;  %v664_v53 = vrot.slane %v655_v52, 4 }
 0x1d6   : > { %v659_v54 = vmax.f32 %v635_v50, %v658_v51  ;;  %v665_v55 = vmax.f32 %v655_v52, %v664_v53  ;;  %v775_v51 = vld [vmem:[%s1707_s7 + $0x10] sm:$0xff]  ;;  %v776_v53 = vld [vmem:[%s1707_s7 + $0x18] sm:$0xff] }
 0x1d8   : > { %v660_v56 = vrot.slane %v659_v54, 2  ;;  %v666_v57 = vrot.slane %v665_v55, 2 }
 0x1da   : > { %v661_v58 = vmax.f32 %v659_v54, %v660_v56  ;;  %v667_v59 = vmax.f32 %v665_v55, %v666_v57 }
 0x1dc   : > { %v662_v60 = vrot.slane %v661_v58, 1  ;;  %v668_v61 = vrot.slane %v667_v59, 1 }
 0x1de   : > { %v663_v62 = vmax.f32 %v661_v58, %v662_v60  ;;  %v669_v63 = vmax.f32 %v667_v59, %v668_v61 }
 0x1e0   : > { %v670_v0 = vsub.f32 %v635_v50, %v663_v62  ;;  %v671_v1 = vsub.f32 %v655_v52, %v669_v63  ;;  %v886_v52 = vld [vmem:[%s1710_s10 + $0x18] sm:$0xff] }
 0x1e2   : > { %v672_v10 = vmul.f32 1.442695, %v670_v0  ;;  %v674_v11 = vmul.f32 1.442695, %v671_v1 }
 0x1e4   : > { %1244 = vpow2.f32 %v672_v10  ;;  %v789_v10 = vpop.permute.xlu0 %788 }
 0x1e5   : > { %1246 = vpow2.f32 %v674_v11 }
 0x1ea   : > { %v1245_v12 = vpop.eup %1244 }
 0x1eb   : > { %v1247_v13 = vpop.eup %1246  ;;  %v676_v14 = vrot.slane %v1245_v12, 4 }
 0x1ec   : > { %v682_v15 = vrot.slane %v1247_v13, 4 }
 0x1ed   : > { %v677_v16 = vadd.f32 %v1245_v12, %v676_v14 }
 0x1ee   : > { %v683_v17 = vadd.f32 %v1247_v13, %v682_v15  ;;  %v784_v15 = vpop.permute.xlu1 %783 }
 0x1ef   : > { %v678_v18 = vrot.slane %v677_v16, 2 }
 0x1f0   : > { %v684_v19 = vrot.slane %v683_v17, 2 }
 0x1f1   : > { %v679_v20 = vadd.f32 %v678_v18, %v677_v16 }
 0x1f2   : > { %v685_v21 = vadd.f32 %v684_v19, %v683_v17 }
 0x1f3   : > { %v680_v22 = vrot.slane %v679_v20, 1 }
 0x1f4   : > { %v686_v23 = vrot.slane %v685_v21, 1 }
 0x1f5   : > { %v681_v24 = vadd.f32 %v680_v22, %v679_v20 }
 0x1f6   : > { %v687_v25 = vadd.f32 %v686_v23, %v685_v21 }
 0x1f7   : > { %1248 = vrcp.f32 %v681_v24  ;;  %v699_v31 = vand.u32 2147483648, %v681_v24  ;;  %v697_v34 = vand.u32 2147483647, %v681_v24  ;;  %vm693_vm4 = vweird.f32 %v681_v24 }
 0x1f8   : > { %1250 = vrcp.f32 %v687_v25  ;;  %v714_v35 = vand.u32 2147483648, %v687_v25  ;;  %v712_v37 = vand.u32 2147483647, %v687_v25  ;;  %vm708_vm6 = vweird.f32 %v687_v25 }
 0x1f9   : > { %v700_v39 = vor.u32 1.1754944e-38, %v699_v31  ;;  %vm698_vm7 = vcmp.eq.f32.partialorder %v697_v34, 8.507059e+37 }
 0x1fa   : > { %v715_v42 = vor.u32 1.1754944e-38, %v714_v35  ;;  %vm713_vm9 = vcmp.eq.f32.partialorder %v712_v37, 8.507059e+37  ;;  %v895_v37 = vpop.permute.xlu0 %894 }
 0x1fd   : > { %v1249_v26 = vpop.eup %1248 }
 0x1fe   : > { %v1251_v27 = vpop.eup %1250  ;;  %v689_v28 = vmul.f32 %v1249_v26, %v681_v24  ;;  %vm694_vm2 = vweird.f32 %v1249_v26 }
 0x1ff   : > { %v704_v29 = vmul.f32 %v1251_v27, %v687_v25  ;;  %vm709_vm3 = vweird.f32 %v1251_v27  ;;  %vm695_vm5 = vmor %vm693_vm4, %vm694_vm2  ;;  %v879_v25 = vld [vmem:[%s1709_s9] sm:$0xff] }
 0x200   : > { %v690_v30 = vsub.f32 1.0, %v689_v28  ;;  %vm710_vm8 = vmor %vm708_vm6, %vm709_vm3  ;;  %v881_v28 = vld [vmem:[%s1709_s9 + $0x10] sm:$0xff] }
 0x201   : > { %v705_v32 = vsub.f32 1.0, %v704_v29  ;;  %v882_v29 = vld [vmem:[%s1709_s9 + $0x18] sm:$0xff] }
 0x202   : > { %v691_v33 = vmul.f32 %v1249_v26, %v690_v30 }
 0x203   : > { %v706_v36 = vmul.f32 %v1251_v27, %v705_v32 }
 0x204   : > { %v692_v38 = vadd.f32 %v1249_v26, %v691_v33 }
 0x205   : > { %v707_v40 = vadd.f32 %v1251_v27, %v706_v36 }
 0x206   : > { %v696_v41 = vsel %vm695_vm5, %v1249_v26, %v692_v38 }
 0x207   : > { %v701_v43 = vsel %vm698_vm7, %v700_v39, %v696_v41  ;;  %v711_v44 = vsel %vm710_vm8, %v1251_v27, %v707_v40  ;;  %v880_v27 = vld [vmem:[%s1709_s9 + $0x8] sm:$0xff] }
 0x208   : > { %v702_v45 = vmul.f32 %v1245_v12, %v701_v43  ;;  %v716_v46 = vsel %vm713_vm9, %v715_v42, %v711_v44  ;;  %v900_v44 = vpop.permute.xlu1 %899 }
 0x209   : > { %v717_v48 = vmul.f32 %v1247_v13, %v716_v46 }
 0x20a   : > { %742 = vmatpush.msrb.mxu0 %v702_v45 }
 0x20b   : > { %765 = vmatpush.msrb.mxu1 %v717_v48  ;;  %1146 = vmatmul.msk.f32.vlgmr.msrb.gmra.mxu0 %vm720_vm10, %v718_v47 }
 0x20c   : > { %1148 = vmatmul.msk.f32.vlgmr.msrb.gmra.mxu1 %vm720_vm10, %v718_v47  ;;  %928 = vmatpush.msra.mxu0 %v1518_v2 }
 0x20d   : > { %957 = vmatpush.msra.mxu1 %v1520_v3  ;;  %v780_v3 = vld [vmem:[%s1708_s8 + $0x18] sm:$0xff] }
 0x20e   : > { %929 = vmatpush.msra.mxu0 %v1523_v4  ;;  %798 = vperm.xlu2 %1243, %v780_v3  }
 0x20f   : > { %958 = vmatpush.msra.mxu1 %v1525_v5 }
 0x210   : > { %930 = vmatpush.msra.mxu0 %v1528_v6  ;;  %v773_v6 = vld [vmem:[%s1707_s7] sm:$0xff] }
 0x211   : > { %959 = vmatpush.msra.mxu1 %v1531_v7  ;;  %v779_v7 = vld [vmem:[%s1708_s8 + $0x10] sm:$0xff] }
 0x212   : > { %931 = vmatpush.msra.mxu0 %v1534_v8  ;;  %v774_v8 = vld [vmem:[%s1707_s7 + $0x8] sm:$0xff] }
 0x213   : > { %1147 = vmatmul.msk.f32.gmra.mxu0 %vm720_vm10, %v719_v49  ;;  %960 = vmatpush.msra.mxu1 %v1537_v9  ;;  %v883_v9 = vld [vmem:[%s1710_s10] sm:$0xff] }
 0x214   : > { %1149 = vmatmul.msk.f32.gmra.mxu1 %vm720_vm10, %v719_v49 }
 0x216   : > { %793 = vperm.xlu2 %1243, %v779_v7  }
 0x21e   : > { %889 = vperm.xlu2 %1243, %v883_v9  }
 0x226   : > { %904 = vperm.xlu2 %1243, %v886_v52  }
 0x268   : > { %v799_v58 = vpop.permute.xlu2 %798 }
 0x270   : > { %v794_v61 = vpop.permute.xlu2 %793 }
 0x278   : > { %v890_v30 = vpop.permute.xlu2 %889 }
 0x288   : > { %v744_v2 = vpop.f32.mrf.mxu0 }
 0x289   : > { %v767_v50 = vpop.f32.mrf.mxu1 }
 0x290   : > { %v747_v4 = vpop.f32.mrf.mxu0 }
 0x291   : > { %v770_v5 = vpop.f32.mrf.mxu1  ;;  %827 = vmatpush.msra.mxu2 %v747_v4 }
 0x292   : > { %856 = vmatpush.msra.mxu3 %v770_v5 }
 0x293   : > { %828 = vmatpush.msra.mxu2 %v744_v2 }
 0x294   : > { %857 = vmatpush.msra.mxu3 %v767_v50  ;;  %1150 = vmatmul.msk.f32.vlgmr.msra.gmra.mxu2 %vm557_vm1, %v773_v6  ;;  %v905_v50 = vpop.permute.xlu2 %904 }
 0x295   : > { %1154 = vmatmul.msk.f32.vlgmr.msra.gmra.mxu3 %vm557_vm1, %v773_v6 }
 0x29c   : > { %1151 = vmatmul.msk.f32.gmra.mxu2 %vm557_vm1, %v774_v8 }
 0x29d   : > { %1155 = vmatmul.msk.f32.gmra.mxu3 %vm557_vm1, %v774_v8 }
 0x2a4   : > { %1152 = vmatmul.msk.f32.gmra.mxu2 %vm557_vm1, %v775_v51 }
 0x2a5   : > { %1156 = vmatmul.msk.f32.gmra.mxu3 %vm557_vm1, %v775_v51 }
 0x2ac   : > { %1153 = vmatmul.msk.f32.gmra.mxu2 %vm557_vm1, %v776_v53 }
 0x2ad   : > { %1157 = vmatmul.msk.f32.gmra.mxu3 %vm557_vm1, %v776_v53 }
 0x317   : > { %v830_v54 = vpop.f32.mrf.mxu2 }
 0x318   : > { %v859_v55 = vpop.f32.mrf.mxu3  ;;  %v831_v18 = vadd.f32 %v830_v54, %v784_v15 }
 0x319   : > { %v860_v20 = vadd.f32 %v859_v55, %v784_v15 }
 0x31a   : > { %v871_v24 = vmax.f32 %v831_v18, 0.0 }
 0x31b   : > { %v872_v26 = vmax.f32 %v860_v20, 0.0 }
 0x31f   : > { %v833_v56 = vpop.f32.mrf.mxu2 }
 0x320   : > { %v862_v57 = vpop.f32.mrf.mxu3  ;;  %v834_v13 = vadd.f32 %v833_v56, %v789_v10 }
 0x321   : > { %v863_v16 = vadd.f32 %v862_v57, %v789_v10 }
 0x322   : > { %v873_v22 = vmax.f32 %v834_v13, 0.0 }
 0x323   : > { %v874_v23 = vmax.f32 %v863_v16, 0.0 }
 0x327   : > { %v836_v59 = vpop.f32.mrf.mxu2 }
 0x328   : > { %v865_v60 = vpop.f32.mrf.mxu3  ;;  %v837_v63 = vadd.f32 %v836_v59, %v794_v61 }
 0x329   : > { %v866_v11 = vadd.f32 %v865_v60, %v794_v61 }
 0x32a   : > { %v875_v19 = vmax.f32 %v837_v63, 0.0 }
 0x32b   : > { %v876_v21 = vmax.f32 %v866_v11, 0.0 }
 0x32f   : > { %v839_v62 = vpop.f32.mrf.mxu2 }
 0x330   : > { %v840_v0 = vadd.f32 %v839_v62, %v799_v58  ;;  %v868_v1 = vpop.f32.mrf.mxu3 }
 0x331   : > { %v869_v12 = vadd.f32 %v868_v1, %v799_v58 }
 0x332   : > { %v877_v14 = vmax.f32 %v840_v0, 0.0 }
 0x333   : > { %v878_v17 = vmax.f32 %v869_v12, 0.0 }
 0x334   : > { %932 = vmatpush.msra.mxu0 %v877_v14 }
 0x335   : > { %961 = vmatpush.msra.mxu1 %v878_v17 }
 0x336   : > { %933 = vmatpush.msra.mxu0 %v875_v19 }
 0x337   : > { %962 = vmatpush.msra.mxu1 %v876_v21 }
 0x338   : > { %934 = vmatpush.msra.mxu0 %v873_v22 }
 0x339   : > { %963 = vmatpush.msra.mxu1 %v874_v23 }
 0x33a   : > { %935 = vmatpush.msra.mxu0 %v871_v24 }
 0x33b   : > { %964 = vmatpush.msra.mxu1 %v872_v26  ;;  %1158 = vmatmul.msk.f32.vlgmr.msra.gmra.mxu0 %vm907_vm11, %v879_v25 }
 0x33c   : > { %1162 = vmatmul.msk.f32.vlgmr.msra.gmra.mxu1 %vm907_vm11, %v879_v25 }
 0x343   : > { %1159 = vmatmul.msk.f32.gmra.mxu0 %vm907_vm11, %v880_v27 }
 0x344   : > { %1163 = vmatmul.msk.f32.gmra.mxu1 %vm907_vm11, %v880_v27 }
 0x34b   : > { %1160 = vmatmul.msk.f32.gmra.mxu0 %vm907_vm11, %v881_v28 }
 0x34c   : > { %1164 = vmatmul.msk.f32.gmra.mxu1 %vm907_vm11, %v881_v28 }
 0x353   : > { %1161 = vmatmul.msk.f32.gmra.mxu0 %vm907_vm11, %v882_v29 }
 0x354   : > { %1165 = vmatmul.msk.f32.gmra.mxu1 %vm907_vm11, %v882_v29 }
 0x3b8   : > { %v937_v31 = vpop.f32.mrf.mxu0 }
 0x3b9   : > { %v938_v32 = vadd.f32 %v937_v31, %v890_v30  ;;  %v966_v33 = vpop.f32.mrf.mxu1 }
 0x3ba   : > { %v967_v34 = vadd.f32 %v966_v33, %v890_v30 }
 0x3bb   : > { %v978_v35 = vmax.f32 %v938_v32, 0.0 }
 0x3bc   : > { %v979_v36 = vmax.f32 %v967_v34, 0.0 }
 0x3bd   : > { %986 = vst [vmem:[%s1651_s15] sm:$0xff] %v978_v35 }
 0x3be   : > { %987 = vst [vmem:[%s1651_s15 + $0x8] sm:$0xff] %v979_v36 }
 0x3c0   : > { %v940_v38 = vpop.f32.mrf.mxu0 }
 0x3c1   : > { %v941_v39 = vadd.f32 %v940_v38, %v895_v37  ;;  %v969_v40 = vpop.f32.mrf.mxu1 }
 0x3c2   : > { %v970_v41 = vadd.f32 %v969_v40, %v895_v37 }
 0x3c3   : > { %v980_v42 = vmax.f32 %v941_v39, 0.0 }
 0x3c4   : > { %v981_v43 = vmax.f32 %v970_v41, 0.0 }
 0x3c5   : > { %988 = vst [vmem:[%s1651_s15 + $0x10] sm:$0xff] %v980_v42 }
 0x3c6   : > { %989 = vst [vmem:[%s1651_s15 + $0x18] sm:$0xff] %v981_v43 }
 0x3c8   : > { %v943_v45 = vpop.f32.mrf.mxu0 }
 0x3c9   : > { %v944_v46 = vadd.f32 %v943_v45, %v900_v44  ;;  %v972_v47 = vpop.f32.mrf.mxu1 }
 0x3ca   : > { %v973_v48 = vadd.f32 %v972_v47, %v900_v44 }
 0x3cb   : > { %v982_v49 = vmax.f32 %v944_v46, 0.0 }
 0x3cc   : > { %v983_v2 = vmax.f32 %v973_v48, 0.0 }
 0x3cd   : > { %990 = vst [vmem:[%s1651_s15 + $0x20] sm:$0xff] %v982_v49 }
 0x3ce   : > { %991 = vst [vmem:[%s1651_s15 + $0x28] sm:$0xff] %v983_v2 }
 0x3d0   : > { %v946_v3 = vpop.f32.mrf.mxu0 }
 0x3d1   : > { %v947_v4 = vadd.f32 %v946_v3, %v905_v50  ;;  %v975_v5 = vpop.f32.mrf.mxu1 }
 0x3d2   : > { %v976_v6 = vadd.f32 %v975_v5, %v905_v50 }
 0x3d3   : > { %v984_v7 = vmax.f32 %v947_v4, 0.0 }
 0x3d4   : > { %v985_v8 = vmax.f32 %v976_v6, 0.0 }
 0x3d5   : > { %992 = vst [vmem:[%s1651_s15 + $0x30] sm:$0xff] %v984_v7 }
 0x3d6   : > { %993 = vst [vmem:[%s1651_s15 + $0x38] sm:$0xff] %v985_v8 }
 0x3d7   : > { %1309 = shalt.err (!%p1306_p0)
}
 0x3d8   : > { %s1369_s21 = smov 256   ;;  %s1370_s15 = smov 16  }
 0x3d9   : > { %1176 = dma.vmem_to_hbm [thread:$0]  (%p1482_p9), %s1010_s26, 1024, %s1012_s27, %s995_s20, %s1369_s21, %s1369_s21, %s1370_s15  }
 0x3da PF: > { %s1730_s23 = sld [smem:[#allocation8_spill]]  ;;  %p1183_p1 = pnand %p1126_p12, %p1489_p11 }
 0x3dc   : > { %p1184_p2 = pneg %p1183_p1 }
 0x3e0   : > { %s1026_s24 = sand.u32 1, %s1730_s23  }
 0x3e1   : > { %s1027_s29 = scalar_lea.sflag [#allocation4], %s1026_s24 }
 0x3e2   : > { %1339 = dma.done.wait (%p1184_p2), %s1027_s29, 1024  }
 0x3e3   : > { %1341 = vsyncadd (%p1184_p2), %s1027_s29, 4294966272  ;;  %s27_s22 = sadd.s32 1, %s1364_s22   ;;  %s1731_s11 = sld [smem:[#allocation12_spill]] }
 0x3e4   : > { %p24_p3 = scmp.ge.s32.totalorder %s27_s22, 4   ;;  %s1732_s20 = sld [smem:[#allocation9_spill]] }
 0x3e5   : > { %s1733_s21 = sld [smem:[#allocation10_spill]]  ;;  %s1734_s17 = smov %s1348_s18 }
 0x3e6   : > { %s1735_s18 = smov %s1352_s19  ;;  %26 = sbr.rel (!%p24_p3) target bundleno = 8 (0x8), region = 115 }
 0x3e9   : > { %s1736_s19 = smov %s1731_s11 }
 0x3eb   :  { %1033 = vsyncpa [#allocation3], 1 }
 0x3ec   :  { %1035 = vsyncpa [#allocation3 + $0x1], 1 }
 0x3ed   :  { %1036 = vsyncpa [#allocation4], 1 }
 0x3ee   :  { %1038 = vsyncpa [#allocation4 + $0x1], 1 }

</bundles_post_ra>
